<compile_context>
chip_gen: v7x
topology: tpu7x:2x2x1
jax: 0.10.0
libtpu: 0.0.40
codegen_flags: <defaults>
</compile_context>

<pallas_src>
import functools

import jax
import jax.numpy as jnp
from jax.experimental import pallas as pl
from jax.experimental.pallas import tpu as pltpu


def _round_up(x, m):
    return (x + m - 1) // m * m


def _transition_kernel(x_ref, w_ref, b_ref, o_ref, pool_ref, *,
                       tile_m, wq, rows_need):
    # x_ref   : (4, M_in, Cin_pad)  four taps of each 2x2 pooling window on the
    #           zero-padded pooled grid, flattened row-major (row = py*Wq + px).
    # w_ref   : (9, Cin_pad, Cout_pad)  3x3 taps, index kh*3 + kw  (bf16)
    # b_ref   : (1, Cout_pad) f32
    # o_ref   : (tile_m, Cout_pad)      lane-dense output tile
    # pool_ref: (rows_need, Cin_pad)    pooled rows this tile consumes (bf16)
    t = pl.program_id(1)
    r0 = pl.multiple_of(t * tile_m, 8)          # tile_m is always 8-aligned

    # ---- fused 2x2 / stride-2 max pool, only the rows this tile needs ------
    p01 = jnp.maximum(x_ref[0, pl.ds(r0, rows_need), :],
                      x_ref[1, pl.ds(r0, rows_need), :])
    p23 = jnp.maximum(x_ref[2, pl.ds(r0, rows_need), :],
                      x_ref[3, pl.ds(r0, rows_need), :])
    pool_ref[...] = jnp.maximum(p01, p23)

    # ---- 3x3 conv: 9 MXU matmuls, every LHS a contiguous slice of pool_ref --
    # Output flat row ro uses pooled flat row ro + dy*Wq + dx (W already padded
    # in the wrapper), so no shifted copies / masking are needed in-kernel.
    acc = None
    for dy in range(3):
        for dx in range(3):
            lhs = pool_ref[pl.ds(dy * wq + dx, tile_m), :]
            part = jnp.dot(lhs, w_ref[3 * dy + dx],
                           preferred_element_type=jnp.float32)
            acc = part if acc is None else acc + part

    o_ref[...] = jnp.maximum(acc + b_ref[...], 0.0).astype(o_ref.dtype)


def transition_new_branch(x_nchw, w_oihw, bias, *, compute_dtype=jnp.bfloat16):
    """maxpool(2,2) -> conv3x3(C->2C, pad=1) -> +bias -> relu, in one kernel.

    Pass compute_dtype=jnp.float32 if bit-closeness to torch's f32 conv matters.
    """
    n, c, h, w = x_nchw.shape
    cout = w_oihw.shape[0]
    hp, wp = h // 2, w // 2                 # MaxPool2d(2,2) floors odd dims
    wq = wp + 2                             # pooled width incl. 1 zero col/side

    cin_pad = _round_up(c, 128)
    cout_pad = _round_up(cout, 128)

    # Output-row tile: multiple of 8, f32 accumulator capped at ~128 KiB, and
    # at most the MXU-native 256 rows.
    m_valid = hp * wq
    max_tile = max(8, (min(256, (128 * 1024) // (4 * cout_pad)) // 8) * 8)
    tile_m = min(max_tile, _round_up(m_valid, 8))
    n_t = pl.cdiv(m_valid, tile_m)
    m_out = n_t * tile_m                    # trailing garbage rows are cropped

    rows_need = _round_up(tile_m + 2 * wq + 2, 8)
    m_in = _round_up(max((hp + 2) * wq, (n_t - 1) * tile_m + rows_need), 8)

    # ---- layout glue: ONE transpose producing the four pooling taps on the --
    # zero-padded pooled grid, flat over (H, W), channels padded to 128 and
    # cast to bf16 (halves input HBM bytes; pooling of rounded values is exact).
    # TODO(synk): drop this transpose entirely if the surrounding model is NHWC.
    xc = x_nchw[:, :, :2 * hp, :2 * wp]
    xp = jnp.pad(xc, ((0, 0), (0, 0), (2, 2), (2, 2)))   # pooled pad == conv pad
    xt = xp.reshape(n, c, hp + 2, 2, wq, 2).transpose(0, 3, 5, 2, 4, 1)
    xt = xt.reshape(n, 4, (hp + 2) * wq, c)
    xt = jnp.pad(xt, ((0, 0), (0, 0), (0, m_in - (hp + 2) * wq),
                      (0, cin_pad - c))).astype(compute_dtype)

    # OIHW -> (kh*kw, Cin_pad, Cout_pad): bf16 feed / f32 accumulate on the MXU.
    w_taps = jnp.transpose(w_oihw, (2, 3, 1, 0)).reshape(9, c, cout)
    w_taps = jnp.pad(w_taps, ((0, 0), (0, cin_pad - c), (0, cout_pad - cout)))
    w_taps = w_taps.astype(compute_dtype)
    b2d = jnp.pad(bias, (0, cout_pad - cout)).reshape(1, cout_pad).astype(jnp.float32)

    kernel = functools.partial(_transition_kernel, tile_m=tile_m, wq=wq,
                               rows_need=rows_need)

    # VMEM budget (double-buffered blocks + scratch), with margin.
    isz = jnp.dtype(compute_dtype).itemsize
    osz = jnp.dtype(x_nchw.dtype).itemsize
    need = (2 * (4 * m_in * cin_pad * isz          # input taps block
                 + 9 * cin_pad * cout_pad * isz    # weights
                 + cout_pad * 4                    # bias
                 + tile_m * cout_pad * osz)        # output tile
            + rows_need * cin_pad * isz)           # pool scratch
    vmem_limit = int(min(max(2 * need + (4 << 20), 32 << 20), 128 << 20))
    # TODO(synk): for very large feature maps the whole-image tap block should
    #             additionally be halo-tiled along H to fit v7x's 64 MiB VMEM.

    out = pl.pallas_call(
        kernel,
        out_shape=jax.ShapeDtypeStruct((n, m_out, cout_pad), x_nchw.dtype),
        grid_spec=pltpu.PrefetchScalarGridSpec(
            num_scalar_prefetch=0,
            grid=(n, n_t),
            in_specs=[
                # Constant index over the tile axis -> fetched once per image.
                pl.BlockSpec((None, 4, m_in, cin_pad), lambda i, t: (i, 0, 0, 0)),
                pl.BlockSpec((9, cin_pad, cout_pad), lambda i, t: (0, 0, 0)),
                pl.BlockSpec((1, cout_pad), lambda i, t: (0, 0)),
            ],
            out_specs=pl.BlockSpec((None, tile_m, cout_pad),
                                   lambda i, t: (i, t, 0)),
            scratch_shapes=[pltpu.VMEM((rows_need, cin_pad), compute_dtype)],
        ),
        compiler_params=pltpu.CompilerParams(
            dimension_semantics=("parallel", "parallel"),
            vmem_limit_bytes=vmem_limit),
    )(xt, w_taps, b2d)

    # (N, M_out, Cout_pad) -> crop garbage rows / padded cols / padded channels
    out = out[:, :m_valid, :cout].reshape(n, hp, wq, cout)[:, :, :wp, :]
    return jnp.transpose(out, (0, 3, 1, 2))


def stage_transition_forward(branches, w_oihw, bias):
    """Pallas equivalent of StageTransition.forward: identities + new branch."""
    new_branch = transition_new_branch(branches[-1], w_oihw, bias)
    return list(branches) + [new_branch]


def reference_new_branch(x_nchw, w_oihw, bias, compute_dtype=jnp.bfloat16):
    """Pure-JAX reference mirroring the kernel's bf16-feed / f32-accumulate path."""
    n, c, h, w = x_nchw.shape
    hp, wp = h // 2, w // 2
    pooled = x_nchw[:, :, :2 * hp, :2 * wp].reshape(n, c, hp, 2, wp, 2).max(axis=(3, 5))
    y = jax.lax.conv_general_dilated(
        pooled.astype(compute_dtype), w_oihw.astype(compute_dtype),
        window_strides=(1, 1), padding=((1, 1), (1, 1)),
        dimension_numbers=("NCHW", "OIHW", "NCHW"),
        preferred_element_type=jnp.float32)
    y = y + bias[None, :, None, None]
    return jnp.maximum(y, 0.0).astype(x_nchw.dtype)


if __name__ == "__main__":
    key = jax.random.PRNGKey(0)
    k1, k2, k3, k4 = jax.random.split(key, 4)

    batch = 2
    num_branches = 2            # number of existing (Identity) branches
    prev_feats = 4              # channels of the last branch
    cout = prev_feats * 2

    # HRNet-style pyramid: higher-resolution branches have fewer channels.
    branch0 = jax.random.normal(k1, (batch, prev_feats // 2, 32, 32), jnp.float32)
    branch1 = jax.random.normal(k2, (batch, prev_feats, 16, 16), jnp.float32)
    branches = [branch0, branch1]
    assert len(branches) == num_branches

    # Deterministic synthetic parameters (torch Conv2d weight layout OIHW).
    w_oihw = 0.1 * jax.random.normal(k3, (cout, prev_feats, 3, 3), jnp.float32)
    bias = 0.1 * jax.random.normal(k4, (cout,), jnp.float32)

    outputs = stage_transition_forward(branches, w_oihw, bias)
    outputs = jax.block_until_ready(outputs)

    # Identity branches must pass through untouched.
    assert jnp.array_equal(outputs[0], branch0)
    assert jnp.array_equal(outputs[1], branch1)

    # New branch: shape (N, 2C, H/2, W/2) and matches the JAX reference.
    ref = reference_new_branch(branch1, w_oihw, bias)
    assert outputs[2].shape == (batch, cout, 8, 8)
    max_err = float(jnp.max(jnp.abs(outputs[2] - ref)))
    assert max_err < 1e-3, f"mismatch vs reference: {max_err}"

    print("KERNEL_OK")
</pallas_src>

<mosaic_0001>
module attributes {stable_mosaic.version = 11 : i64} {
  func.func @_transition_kernel(%arg0: i32, %arg1: i32, %arg2: memref<1x4x104x128xbf16, #tpu.memory_space<vmem>>, %arg3: memref<9x128x128xbf16, #tpu.memory_space<vmem>>, %arg4: memref<1x128xf32, #tpu.memory_space<vmem>>, %arg5: memref<1x80x128xf32, #tpu.memory_space<vmem>>, %arg6: memref<104x128xbf16, #tpu.memory_space<vmem>>) attributes {dimension_semantics = [#tpu.dimension_semantics<parallel>, #tpu.dimension_semantics<parallel>], iteration_bounds = array<i64: 2, 1>, scalar_prefetch = 0 : i64, scratch_operands = 1 : i64, tpu.core_type = #tpu.core_type<tc>, window_params = [{transform_indices = @transform_0, window_bounds = array<i64: 1, 4, 104, 128>}, {pipeline_mode = #tpu.pipeline_mode<synchronous>, transform_indices = @transform_1, window_bounds = array<i64: 9, 128, 128>}, {pipeline_mode = #tpu.pipeline_mode<synchronous>, transform_indices = @transform_2, window_bounds = array<i64: 1, 128>}, {transform_indices = @transform_3, window_bounds = array<i64: 1, 80, 128>}]} {
    %c80_i32 = arith.constant 80 : i32
    %0 = arith.muli %arg1, %c80_i32 : i32
    %1 = tpu.assume_multiple %0, 8 : i32
    %c0 = arith.constant 0 : index
    %c0_0 = arith.constant 0 : index
    %2 = arith.index_cast %1 : i32 to index
    %c0_1 = arith.constant 0 : index
    %3 = vector.load %arg2[%c0, %c0_0, %2, %c0_1] : memref<1x4x104x128xbf16, #tpu.memory_space<vmem>>, vector<1x1x104x128xbf16>
    %4 = vector.shape_cast %3 : vector<1x1x104x128xbf16> to vector<104x128xbf16>
    %c0_2 = arith.constant 0 : index
    %c1 = arith.constant 1 : index
    %5 = arith.index_cast %1 : i32 to index
    %c0_3 = arith.constant 0 : index
    %6 = vector.load %arg2[%c0_2, %c1, %5, %c0_3] : memref<1x4x104x128xbf16, #tpu.memory_space<vmem>>, vector<1x1x104x128xbf16>
    %7 = vector.shape_cast %6 : vector<1x1x104x128xbf16> to vector<104x128xbf16>
    %8 = arith.maximumf %4, %7 : vector<104x128xbf16>
    %c0_4 = arith.constant 0 : index
    %c2 = arith.constant 2 : index
    %9 = arith.index_cast %1 : i32 to index
    %c0_5 = arith.constant 0 : index
    %10 = vector.load %arg2[%c0_4, %c2, %9, %c0_5] : memref<1x4x104x128xbf16, #tpu.memory_space<vmem>>, vector<1x1x104x128xbf16>
    %11 = vector.shape_cast %10 : vector<1x1x104x128xbf16> to vector<104x128xbf16>
    %c0_6 = arith.constant 0 : index
    %c3 = arith.constant 3 : index
    %12 = arith.index_cast %1 : i32 to index
    %c0_7 = arith.constant 0 : index
    %13 = vector.load %arg2[%c0_6, %c3, %12, %c0_7] : memref<1x4x104x128xbf16, #tpu.memory_space<vmem>>, vector<1x1x104x128xbf16>
    %14 = vector.shape_cast %13 : vector<1x1x104x128xbf16> to vector<104x128xbf16>
    %15 = arith.maximumf %11, %14 : vector<104x128xbf16>
    %16 = arith.maximumf %8, %15 : vector<104x128xbf16>
    %c0_8 = arith.constant 0 : index
    %c0_9 = arith.constant 0 : index
    %17 = vector.load %arg6[%c0_8, %c0_9] : memref<104x128xbf16, #tpu.memory_space<vmem>>, vector<104x128xbf16>
    tpu.vector_store %arg6[%c0_8, %c0_9], %16 {strides = array<i32>} : memref<104x128xbf16, #tpu.memory_space<vmem>>, vector<104x128xbf16>,
    %c0_10 = arith.constant 0 : index
    %c0_11 = arith.constant 0 : index
    %18 = vector.load %arg6[%c0_10, %c0_11] : memref<104x128xbf16, #tpu.memory_space<vmem>>, vector<80x128xbf16>
    %c0_12 = arith.constant 0 : index
    %c0_13 = arith.constant 0 : index
    %c0_14 = arith.constant 0 : index
    %19 = vector.load %arg3[%c0_12, %c0_13, %c0_14] : memref<9x128x128xbf16, #tpu.memory_space<vmem>>, vector<1x128x128xbf16>
    %20 = vector.shape_cast %19 : vector<1x128x128xbf16> to vector<128x128xbf16>
    %cst = arith.constant dense<0.000000e+00> : vector<80x128xf32>
    %21 = tpu.matmul %18, %20, %cst {dimension_numbers = #tpu.dot_dimension_numbers<[1], [0], [0], [1], [0, 0, 1, 1], [], []>} : vector<80x128xbf16>, vector<128x128xbf16>, vector<80x128xf32> -> vector<80x128xf32>
    %c1_15 = arith.constant 1 : index
    %c0_16 = arith.constant 0 : index
    %22 = vector.load %arg6[%c1_15, %c0_16] : memref<104x128xbf16, #tpu.memory_space<vmem>>, vector<80x128xbf16>
    %c1_17 = arith.constant 1 : index
    %c0_18 = arith.constant 0 : index
    %c0_19 = arith.constant 0 : index
    %23 = vector.load %arg3[%c1_17, %c0_18, %c0_19] : memref<9x128x128xbf16, #tpu.memory_space<vmem>>, vector<1x128x128xbf16>
    %24 = vector.shape_cast %23 : vector<1x128x128xbf16> to vector<128x128xbf16>
    %cst_20 = arith.constant dense<0.000000e+00> : vector<80x128xf32>
    %25 = tpu.matmul %22, %24, %cst_20 {dimension_numbers = #tpu.dot_dimension_numbers<[1], [0], [0], [1], [0, 0, 1, 1], [], []>} : vector<80x128xbf16>, vector<128x128xbf16>, vector<80x128xf32> -> vector<80x128xf32>
    %26 = arith.addf %21, %25 : vector<80x128xf32>
    %c2_21 = arith.constant 2 : index
    %c0_22 = arith.constant 0 : index
    %27 = vector.load %arg6[%c2_21, %c0_22] : memref<104x128xbf16, #tpu.memory_space<vmem>>, vector<80x128xbf16>
    %c2_23 = arith.constant 2 : index
    %c0_24 = arith.constant 0 : index
    %c0_25 = arith.constant 0 : index
    %28 = vector.load %arg3[%c2_23, %c0_24, %c0_25] : memref<9x128x128xbf16, #tpu.memory_space<vmem>>, vector<1x128x128xbf16>
    %29 = vector.shape_cast %28 : vector<1x128x128xbf16> to vector<128x128xbf16>
    %cst_26 = arith.constant dense<0.000000e+00> : vector<80x128xf32>
    %30 = tpu.matmul %27, %29, %cst_26 {dimension_numbers = #tpu.dot_dimension_numbers<[1], [0], [0], [1], [0, 0, 1, 1], [], []>} : vector<80x128xbf16>, vector<128x128xbf16>, vector<80x128xf32> -> vector<80x128xf32>
    %31 = arith.addf %26, %30 : vector<80x128xf32>
    %c10 = arith.constant 10 : index
    %c0_27 = arith.constant 0 : index
    %32 = vector.load %arg6[%c10, %c0_27] : memref<104x128xbf16, #tpu.memory_space<vmem>>, vector<80x128xbf16>
    %c3_28 = arith.constant 3 : index
    %c0_29 = arith.constant 0 : index
    %c0_30 = arith.constant 0 : index
    %33 = vector.load %arg3[%c3_28, %c0_29, %c0_30] : memref<9x128x128xbf16, #tpu.memory_space<vmem>>, vector<1x128x128xbf16>
    %34 = vector.shape_cast %33 : vector<1x128x128xbf16> to vector<128x128xbf16>
    %cst_31 = arith.constant dense<0.000000e+00> : vector<80x128xf32>
    %35 = tpu.matmul %32, %34, %cst_31 {dimension_numbers = #tpu.dot_dimension_numbers<[1], [0], [0], [1], [0, 0, 1, 1], [], []>} : vector<80x128xbf16>, vector<128x128xbf16>, vector<80x128xf32> -> vector<80x128xf32>
    %36 = arith.addf %31, %35 : vector<80x128xf32>
    %c11 = arith.constant 11 : index
    %c0_32 = arith.constant 0 : index
    %37 = vector.load %arg6[%c11, %c0_32] : memref<104x128xbf16, #tpu.memory_space<vmem>>, vector<80x128xbf16>
    %c4 = arith.constant 4 : index
    %c0_33 = arith.constant 0 : index
    %c0_34 = arith.constant 0 : index
    %38 = vector.load %arg3[%c4, %c0_33, %c0_34] : memref<9x128x128xbf16, #tpu.memory_space<vmem>>, vector<1x128x128xbf16>
    %39 = vector.shape_cast %38 : vector<1x128x128xbf16> to vector<128x128xbf16>
    %cst_35 = arith.constant dense<0.000000e+00> : vector<80x128xf32>
    %40 = tpu.matmul %37, %39, %cst_35 {dimension_numbers = #tpu.dot_dimension_numbers<[1], [0], [0], [1], [0, 0, 1, 1], [], []>} : vector<80x128xbf16>, vector<128x128xbf16>, vector<80x128xf32> -> vector<80x128xf32>
    %41 = arith.addf %36, %40 : vector<80x128xf32>
    %c12 = arith.constant 12 : index
    %c0_36 = arith.constant 0 : index
    %42 = vector.load %arg6[%c12, %c0_36] : memref<104x128xbf16, #tpu.memory_space<vmem>>, vector<80x128xbf16>
    %c5 = arith.constant 5 : index
    %c0_37 = arith.constant 0 : index
    %c0_38 = arith.constant 0 : index
    %43 = vector.load %arg3[%c5, %c0_37, %c0_38] : memref<9x128x128xbf16, #tpu.memory_space<vmem>>, vector<1x128x128xbf16>
    %44 = vector.shape_cast %43 : vector<1x128x128xbf16> to vector<128x128xbf16>
    %cst_39 = arith.constant dense<0.000000e+00> : vector<80x128xf32>
    %45 = tpu.matmul %42, %44, %cst_39 {dimension_numbers = #tpu.dot_dimension_numbers<[1], [0], [0], [1], [0, 0, 1, 1], [], []>} : vector<80x128xbf16>, vector<128x128xbf16>, vector<80x128xf32> -> vector<80x128xf32>
    %46 = arith.addf %41, %45 : vector<80x128xf32>
    %c20 = arith.constant 20 : index
    %c0_40 = arith.constant 0 : index
    %47 = vector.load %arg6[%c20, %c0_40] : memref<104x128xbf16, #tpu.memory_space<vmem>>, vector<80x128xbf16>
    %c6 = arith.constant 6 : index
    %c0_41 = arith.constant 0 : index
    %c0_42 = arith.constant 0 : index
    %48 = vector.load %arg3[%c6, %c0_41, %c0_42] : memref<9x128x128xbf16, #tpu.memory_space<vmem>>, vector<1x128x128xbf16>
    %49 = vector.shape_cast %48 : vector<1x128x128xbf16> to vector<128x128xbf16>
    %cst_43 = arith.constant dense<0.000000e+00> : vector<80x128xf32>
    %50 = tpu.matmul %47, %49, %cst_43 {dimension_numbers = #tpu.dot_dimension_numbers<[1], [0], [0], [1], [0, 0, 1, 1], [], []>} : vector<80x128xbf16>, vector<128x128xbf16>, vector<80x128xf32> -> vector<80x128xf32>
    %51 = arith.addf %46, %50 : vector<80x128xf32>
    %c21 = arith.constant 21 : index
    %c0_44 = arith.constant 0 : index
    %52 = vector.load %arg6[%c21, %c0_44] : memref<104x128xbf16, #tpu.memory_space<vmem>>, vector<80x128xbf16>
    %c7 = arith.constant 7 : index
    %c0_45 = arith.constant 0 : index
    %c0_46 = arith.constant 0 : index
    %53 = vector.load %arg3[%c7, %c0_45, %c0_46] : memref<9x128x128xbf16, #tpu.memory_space<vmem>>, vector<1x128x128xbf16>
    %54 = vector.shape_cast %53 : vector<1x128x128xbf16> to vector<128x128xbf16>
    %cst_47 = arith.constant dense<0.000000e+00> : vector<80x128xf32>
    %55 = tpu.matmul %52, %54, %cst_47 {dimension_numbers = #tpu.dot_dimension_numbers<[1], [0], [0], [1], [0, 0, 1, 1], [], []>} : vector<80x128xbf16>, vector<128x128xbf16>, vector<80x128xf32> -> vector<80x128xf32>
    %56 = arith.addf %51, %55 : vector<80x128xf32>
    %c22 = arith.constant 22 : index
    %c0_48 = arith.constant 0 : index
    %57 = vector.load %arg6[%c22, %c0_48] : memref<104x128xbf16, #tpu.memory_space<vmem>>, vector<80x128xbf16>
    %c8 = arith.constant 8 : index
    %c0_49 = arith.constant 0 : index
    %c0_50 = arith.constant 0 : index
    %58 = vector.load %arg3[%c8, %c0_49, %c0_50] : memref<9x128x128xbf16, #tpu.memory_space<vmem>>, vector<1x128x128xbf16>
    %59 = vector.shape_cast %58 : vector<1x128x128xbf16> to vector<128x128xbf16>
    %cst_51 = arith.constant dense<0.000000e+00> : vector<80x128xf32>
    %60 = tpu.matmul %57, %59, %cst_51 {dimension_numbers = #tpu.dot_dimension_numbers<[1], [0], [0], [1], [0, 0, 1, 1], [], []>} : vector<80x128xbf16>, vector<128x128xbf16>, vector<80x128xf32> -> vector<80x128xf32>
    %61 = arith.addf %56, %60 : vector<80x128xf32>
    %c0_52 = arith.constant 0 : index
    %c0_53 = arith.constant 0 : index
    %62 = vector.load %arg4[%c0_52, %c0_53] : memref<1x128xf32, #tpu.memory_space<vmem>>, vector<1x128xf32>
    %63 = vector.broadcast %62 : vector<1x128xf32> to vector<80x128xf32>
    %64 = arith.addf %61, %63 : vector<80x128xf32>
    %cst_54 = arith.constant 0.000000e+00 : f32
    %65 = vector.broadcast %cst_54 : f32 to vector<80x128xf32>
    %66 = arith.maximumf %64, %65 : vector<80x128xf32>
    %c0_55 = arith.constant 0 : index
    %c0_56 = arith.constant 0 : index
    %c0_57 = arith.constant 0 : index
    %67 = vector.load %arg5[%c0_55, %c0_56, %c0_57] : memref<1x80x128xf32, #tpu.memory_space<vmem>>, vector<1x80x128xf32>
    %68 = vector.shape_cast %67 : vector<1x80x128xf32> to vector<80x128xf32>
    %69 = vector.shape_cast %66 : vector<80x128xf32> to vector<1x80x128xf32>
    tpu.vector_store %arg5[%c0_55, %c0_56, %c0_57], %69 {strides = array<i32>} : memref<1x80x128xf32, #tpu.memory_space<vmem>>, vector<1x80x128xf32>,
    return
  }
  func.func @transform_0(%arg0: i32, %arg1: i32) -> (i32, i32, i32, i32) {
    %c0_i32 = arith.constant 0 : i32
    %c0_i32_0 = arith.constant 0 : i32
    %c0_i32_1 = arith.constant 0 : i32
    %c0_i32_2 = arith.constant 0 : i32
    return %arg0, %c0_i32, %c0_i32_0, %c0_i32_1 : i32, i32, i32, i32
  }
  func.func @transform_1(%arg0: i32, %arg1: i32) -> (i32, i32, i32) {
    %c0_i32 = arith.constant 0 : i32
    %c0_i32_0 = arith.constant 0 : i32
    %c0_i32_1 = arith.constant 0 : i32
    %c0_i32_2 = arith.constant 0 : i32
    return %c0_i32, %c0_i32_0, %c0_i32_1 : i32, i32, i32
  }
  func.func @transform_2(%arg0: i32, %arg1: i32) -> (i32, i32) {
    %c0_i32 = arith.constant 0 : i32
    %c0_i32_0 = arith.constant 0 : i32
    %c0_i32_1 = arith.constant 0 : i32
    return %c0_i32, %c0_i32_0 : i32, i32
  }
  func.func @transform_3(%arg0: i32, %arg1: i32) -> (i32, i32, i32) {
    %c0_i32 = arith.constant 0 : i32
    %c0_i32_0 = arith.constant 0 : i32
    return %arg0, %arg1, %c0_i32 : i32, i32, i32
  }
}

</mosaic_0001>

<bundles_post_ra>
// kernel: tpu_custom_call.1
= control target key start
LH: loop header
LB: loop body
LE: loop exit
PB: predicated region body
PF: predicated region fallthrough
CT: control target
= control target key end

     0   :  { %8 = vsyncpa [#allocation4], 0  ;;  %s3828_s0 = inlined_call_operand.hbm [shape: bf16[2,4,104,128], index: 0, kind: input, shape index: {}]   ;;  %s3829_s1 = inlined_call_operand.hbm [shape: bf16[9,128,128], index: 1, kind: input, shape index: {}]   ;;  %s3830_s2 = inlined_call_operand.vmem [shape: f32[1,128], index: 2, kind: input, shape index: {}]   ;;  %s3831_s3 = inlined_call_operand.hbm [shape: f32[2,80,128], index: 3, kind: output, shape index: {}]  }
   0x1   :  { %10 = vsyncpa [#allocation4 + $0x1], 0 }
   0x2   :  { %11 = vsyncpa [#allocation7], 0 }
   0x3   :  { %12 = vsyncpa [#allocation5], 0 }
   0x4   :  { %14 = vsyncpa [#allocation5 + $0x1], 0  ;;  %s3198_s12 = smov 0   ;;  %s3200_s13 = smov 0  }
   0x5   :  { %s3202_s14 = smov 0   ;;  %s3204_s15 = smov 0  }
   0x6   :  { %s3206_s16 = smov 0   ;;  %s3208_s17 = smov 0  }
   0x7 LB: > { %s2200_s18 = sadd.s32 4294967295, %s3167_s17   ;;  %s2201_s19 = sadd.s32 4294967294, %s3167_s17   ;;  %s3167_s17 = sphi %s3208_s17, %s20_s17   ;;  %s3163_s16 = sphi %s3206_s16, %s3854_s16   ;;  %s3159_s15 = sphi %s3204_s15, %s3853_s15   ;;  %s3155_s14 = sphi %s3202_s14, %s3852_s14   ;;  %s3151_s13 = sphi %s3200_s13, %s3851_s13   ;;  %s3147_s12 = sphi %s3198_s12, %s3850_s12  }
   0x8   : > { %p52_p0 = scmp.ne.s32.totalorder %s3151_s13, %s3147_s12  ;;  %p3232_p1 = scmp.eq.s32.totalorder %s2200_s18, 0 }
   0x9   : > { %p3236_p2 = scmp.eq.s32.totalorder %s2200_s18, 1  ;;  %p126_p3 = scmp.eq.s32.totalorder %s2201_s19, 1 }
   0xa   : > { %s3836_s20 = scalar_select %p3232_p1, 1, 0 }
   0xb   : > { %s3837_s21 = scalar_select %p3236_p2, 1, 0 }
   0xc   : > { %p3242_p4 = por %p3232_p1, %p52_p0  ;;  %p2202_p5 = scmp.ge.s32.totalorder %s3167_s17, 1 }
   0xd   : > { %p3247_p6 = por %p126_p3, %p52_p0  ;;  %p133_p7 = scmp.lt.s32.totalorder %s3167_s17, 3 }
   0xe   : > { %s3838_s22 = scalar_select %p3242_p4, 1, 0 }
   0xf   : > { %s3839_s23 = scalar_select %p3247_p6, 1, 0 }
  0x10   : > { %p3252_p8 = pnand %p2202_p5, %p133_p7  ;;  %s3169_s25 = smov [#allocation6]  }
  0x11   : > { %s145_s26 = sshll.u32 %s3169_s25, 4  ;;  %s32_s28 = sadd.s32 1, %s3163_s16  ;;  %s146_s26 = int_to_ptr.vmem [resolvable:$true] %s145_s26 }
  0x12   : > { %s3840_s24 = scalar_select %p3252_p8, 1, 0 }
  0x13   : > { %p2857_p9 = pneg %p3252_p8  ;;  %s3023_s4 = scalar_lea.hbm %s3829_s1, 9216 }
  0x14   : > { %p3024_p12 = scmp.ne.s32.totalorder %s3829_s1, %s3023_s4  ;;  %p3030_p5 = scmp.lt.u32.totalorder %s3023_s4, %s3829_s1 }
  0x15   : > { %p3261_p11 = pnand %p2857_p9, %p3232_p1 }
  0x17   : > { %p3025_p13 = pneg %p3261_p11 }
  0x19   : > { %p3026_p0 = pnand %p3025_p13, %p3024_p12 }
  0x1b   : > { %p3027_p3 = pneg %p3026_p0 }
  0x1d   : > { %p3032_p7 = pnand %p3030_p5, %p3027_p3 }
  0x1f   : > { %3035 = shalt.err (!%p3032_p7)
}
  0x20   : > { %s3036_s9 = scalar_lea.vmem %s146_s26, 9216  ;;  %p3044_p1 = scmp.lt.s32.totalorder %s146_s26, %s146_s26 }
  0x21   : > { %p3037_p9 = scmp.ne.s32.totalorder %s146_s26, %s3036_s9  ;;  %p3045_p4 = scmp.lt.s32.totalorder %s3036_s9, %s3036_s9 }
  0x23   : > { %p3039_p10 = pnand %p3037_p9, %p3025_p13  ;;  %p3046_p8 = por %p3045_p4, %p3044_p1 }
  0x25   : > { %p3040_p6 = pneg %p3039_p10 }
  0x27   : > { %p3047_p2 = pnand %p3046_p8, %p3040_p6 }
  0x29   : > { %3050 = shalt.err (!%p3047_p2)
}
  0x2a   : > { %s3170_s10 = smov 64   ;;  %s3171_s11 = smov 4  }
  0x2b   : > { %2860 = dma.hbm_to_vmem [thread:$0]  (!%p3261_p11), %s3829_s1, 9216, %s146_s26, [#allocation7], %s3170_s10, %s3170_s10, %s3171_s11  }
  0x2c   : > { %p34_p1 = scmp.ge.s32.totalorder %s32_s28, 2  ;;  %s39_s25 = sadd.s32 1, %s3155_s14 }
  0x2d   : > { %p46_p2 = scmp.ne.s32.totalorder %s3155_s14, %s3151_s13  ;;  %p47_p4 = scmp.eq.s32.totalorder %s3167_s17, 0 }
  0x2e   : > { %s3856_s28 = smov (%p34_p1, %s32_s28), 0  ;;  %p3842_p8 = scmp.ne.s32.totalorder %s3837_s21, 0 }
  0x2f   : > { %p48_p6 = por %p47_p4, %p46_p2  ;;  %s36_s27 = ssub.s32 %s3163_s16, %s3856_s28 }
  0x30   : > { %p3293_p10 = por %p3842_p8, %p46_p2  ;;  %p2870_p12 = scmp.lt.s32.totalorder %s3167_s17, 2 }
  0x31   : > { %p37_p13 = scmp.eq.s32.totalorder %s36_s27, 0  ;;  %s162_s30 = sand.u32 1, %s3155_s14  }
  0x32   : > { %s2844_s4 = smul.u32 208, %s162_s30  ;;  %p3305_p11 = pnand %p2870_p12, %p48_p6 }
  0x33   : > { %s3302_s5 = scalar_select %p37_p13, %s3155_s14, %s39_s25  }
  0x34   : > { %s2845_s26 = smul.u32 3328, %s3163_s16  ;;  %s166_s6 = scalar_lea.vmem [#allocation3], %s2844_s4 }
  0x35   : > { %s173_s7 = sshll.u32 %s166_s6, 4  ;;  %s3316_s19 = scalar_lea.sflag [#allocation4], %s162_s30  ;;  %s3314_s7 = int_to_ptr.vmem [resolvable:$true] %s173_s7 }
  0x36   : > { %s3312_s18 = scalar_lea.hbm %s3828_s0, %s2845_s26  ;;  %p3053_p3 = pneg %p3305_p11 }
  0x37   : > { %s3051_s25 = scalar_lea.hbm %s3312_s18, 3328  ;;  %s3056_s26 = scalar_lea.hbm %s3828_s0, 6656 }
  0x38   : > { %p3052_p0 = scmp.ne.s32.totalorder %s3312_s18, %s3051_s25  ;;  %p3057_p9 = scmp.lt.u32.totalorder %s3312_s18, %s3828_s0 }
  0x39   : > { %p3058_p1 = scmp.lt.u32.totalorder %s3056_s26, %s3051_s25  ;;  %p3060_p4 = scmp.lt.u32.totalorder %s3051_s25, %s3312_s18 }
  0x3a   : > { %p3054_p5 = pnand %p3053_p3, %p3052_p0 }
  0x3b   : > { %p3059_p2 = por %p3058_p1, %p3057_p9 }
  0x3c   : > { %p3055_p7 = pneg %p3054_p5 }
  0x3d   : > { %p3061_p6 = por %p3060_p4, %p3059_p2 }
  0x3f   : > { %p3062_p8 = pnand %p3061_p6, %p3055_p7 }
  0x41   : > { %3065 = shalt.err (!%p3062_p8)
}
  0x42   : > { %s3066_s30 = scalar_lea.vmem %s3314_s7, 3328  ;;  %s3172_s21 = smov [#allocation3]  }
  0x43   : > { %p3067_p12 = scmp.ne.s32.totalorder %s3314_s7, %s3066_s30  ;;  %s3071_s27 = sshll.u32 %s3172_s21, 4  ;;  %s3072_s27 = int_to_ptr.vmem [resolvable:$false] %s3071_s27 }
  0x44   : > { %s3073_s4 = scalar_lea.vmem %s3072_s27, 6656  ;;  %p3074_p5 = scmp.lt.s32.totalorder %s3314_s7, %s3072_s27 }
  0x45   : > { %p3069_p13 = pnand %p3067_p12, %p3053_p3  ;;  %p3075_p9 = scmp.lt.s32.totalorder %s3073_s4, %s3066_s30 }
  0x47   : > { %p3070_p0 = pneg %p3069_p13  ;;  %p3076_p1 = por %p3075_p9, %p3074_p5 }
  0x49   : > { %p3077_p2 = pnand %p3076_p1, %p3070_p0 }
  0x4b   : > { %3080 = shalt.err (!%p3077_p2)
}
  0x4c   : > { %2864 = dma.hbm_to_vmem [thread:$0]  (!%p3305_p11), %s3312_s18, 3328, %s3314_s7, %s3316_s19, %s3170_s10, %s3170_s10, %s3171_s11  }
  0x4d   : > { %p3845_p3 = scmp.ne.s32.totalorder %s3840_s24, 0 }
  0x4e   : > { %s3350_s25 = sand.u32 (!%p3845_p3), 1, %s3151_s13   ;;  %p3846_p7 = scmp.ne.s32.totalorder (!%p3845_p3), %s3838_s22, 0 }
  0x4f   : > { %185 = sbr.rel (%p3845_p3) target bundleno = 537 (0x219), region = 32  ;;  %s188_s6 = scalar_lea.sflag (!%p3845_p3), [#allocation4], %s3350_s25 }
  0x50   : > { %s2846_s26 = smul.u32 (!%p3845_p3), 208, %s3350_s25 }
  0x52   : > { %s3354_s9 = scalar_lea.vmem (!%p3845_p3), [#allocation3], %s2846_s26 }
  0x56   : > { %3134 = dma.done.wait (%p3846_p7), %s188_s6, 3328  }
  0x57   : > { %3136 = vsyncadd (%p3846_p7), %s188_s6, 4294963968  ;;  %p3847_p11 = scmp.ne.s32.totalorder %s3836_s20, 0 }
  0x59   : > { %3138 = dma.done.wait (%p3847_p11), [#allocation7], 9216  }
  0x5a   : > { %3140 = vsyncadd (%p3847_p11), [#allocation7], 4294958080  ;;  %v3173_v0 = vmov 0.0   ;;  %vm3174_vm0 = vmmov 0   ;;  %v2928_v1 = vld [vmem:[#allocation6 + $0x40] sm:$0xff]   ;;  %v2930_v3 = vld [vmem:[#allocation6 + $0x48] sm:$0xff]  }
  0x5b   : > { %2504 = vmatprep.subr.bf16.mxu0 %v3173_v0  ;;  %2540 = vmatprep.subr.bf16.mxu1 %v3173_v0  ;;  %v2929_v2 = vld [vmem:[#allocation6] sm:$0xff]   ;;  %v2931_v4 = vld [vmem:[#allocation6 + $0x8] sm:$0xff]   ;;  %v2932_v5 = vld [vmem:[#allocation6 + $0x50] sm:$0xff]   ;;  %vm410_vm1 = vsmask.f32 7424  ;;  %vm728_vm2 = vcmask 1046528  }
  0x5c   : > { %2520 = vmatprep.mubr.msk.bf16.mxu0 %vm3174_vm0, %v3173_v0  ;;  %2556 = vmatprep.mubr.msk.bf16.mxu1 %vm3174_vm0, %v3173_v0  ;;  %v2933_v6 = vld [vmem:[#allocation6 + $0x10] sm:$0xff]   ;;  %v2934_v7 = vld [vmem:[#allocation6 + $0x58] sm:$0xff]   ;;  %v2936_v9 = vld [vmem:[#allocation6 + $0x60] sm:$0xff]   ;;  %vm1311_vm3 = vcmask 1045504   ;;  %vm1100_vm4 = vsmask.f32 6400 }
  0x5d   : > { %2505 = vmatpush3.bf16.msra.mxu0 %v2928_v1  ;;  %2541 = vmatpush3.bf16.msra.mxu1 %v2929_v2  ;;  %v2935_v8 = vld [vmem:[#allocation6 + $0x18] sm:$0xff]   ;;  %v2937_v10 = vld [vmem:[#allocation6 + $0x20] sm:$0xff]   ;;  %v2938_v11 = vld [vmem:[#allocation6 + $0x68] sm:$0xff]   ;;  %vm1683_vm5 = vsmask.f32 5376  ;;  %vm1894_vm6 = vcmask 1044480  }
  0x5e   : > { %2506 = vmatprep.subr.bf16.mxu0 %v3173_v0  ;;  %2542 = vmatprep.subr.bf16.mxu1 %v3173_v0  ;;  %v225_v12 = vld [vmem:[%s3354_s9] sm:$0xf]  ;;  %v226_v13 = vld [vmem:[%s3354_s9 + $0x4] sm:$0xf]  ;;  %v227_v14 = vld [vmem:[%s3354_s9 + $0x8] sm:$0xf] }
  0x5f   : > { %v2939_v15 = vld [vmem:[#allocation6 + $0x28] sm:$0xff]   ;;  %v2208_v17 = vld [vmem:[%s3354_s9 + $0x34] sm:$0xf]  ;;  %v2211_v20 = vld [vmem:[%s3354_s9 + $0x40] sm:$0xf]  ;;  %s2847_s20 = smul.u32 80, %s3350_s25 }
  0x60   : > { %v228_v16 = vld [vmem:[%s3354_s9 + $0xc] sm:$0xf]  ;;  %v2209_v18 = vld [vmem:[%s3354_s9 + $0x38] sm:$0xf]  ;;  %v2210_v19 = vld [vmem:[%s3354_s9 + $0x3c] sm:$0xf]  ;;  %v254_v22 = vmax.bf16 %v2208_v17, %v225_v12 }
  0x61   : > { %2507 = vmatpush3.bf16.msra.mxu0 %v2930_v3  ;;  %2543 = vmatpush3.bf16.msra.mxu1 %v2931_v4  ;;  %v2221_v21 = vld [vmem:[%s3354_s9 + $0x68] sm:$0xf]  ;;  %v255_v23 = vmax.bf16 %v2209_v18, %v226_v13  ;;  %v256_v24 = vmax.bf16 %v2210_v19, %v227_v14  ;;  %v2222_v25 = vld [vmem:[%s3354_s9 + $0x6c] sm:$0xf]  ;;  %v2223_v26 = vld [vmem:[%s3354_s9 + $0x70] sm:$0xf]  ;;  %v257_v28 = vmax.bf16 %v2211_v20, %v228_v16 }
  0x62   : > { %2508 = vmatprep.subr.bf16.mxu0 %v3173_v0  ;;  %2544 = vmatprep.subr.bf16.mxu1 %v3173_v0  ;;  %v2224_v27 = vld [vmem:[%s3354_s9 + $0x74] sm:$0xf]  ;;  %v2234_v29 = vld [vmem:[%s3354_s9 + $0x9c] sm:$0xf]  ;;  %v2235_v30 = vld [vmem:[%s3354_s9 + $0xa0] sm:$0xf] }
  0x63   : > { %v2236_v31 = vld [vmem:[%s3354_s9 + $0xa4] sm:$0xf]  ;;  %v2237_v32 = vld [vmem:[%s3354_s9 + $0xa8] sm:$0xf]  ;;  %v299_v33 = vmax.bf16 %v2234_v29, %v2221_v21  ;;  %v300_v34 = vmax.bf16 %v2235_v30, %v2222_v25  ;;  %v229_v42 = vld [vmem:[%s3354_s9 + $0x10] sm:$0xf] }
  0x64   : > { %v301_v35 = vmax.bf16 %v2236_v31, %v2223_v26  ;;  %v2940_v36 = vld [vmem:[#allocation6 + $0x70] sm:$0xff]   ;;  %v302_v37 = vmax.bf16 %v2237_v32, %v2224_v27  ;;  %v2213_v46 = vld [vmem:[%s3354_s9 + $0x48] sm:$0xf]  ;;  %v2225_v47 = vld [vmem:[%s3354_s9 + $0x78] sm:$0xf]  ;;  %s3747_s10 = scalar_lea.vmem [#allocation8], %s2847_s20 }
  0x65   : > { %2509 = vmatpush3.bf16.msra.mxu0 %v2932_v5  ;;  %2545 = vmatpush3.bf16.msra.mxu1 %v2933_v6  ;;  %v2941_v38 = vld [vmem:[#allocation6 + $0x30] sm:$0xff]   ;;  %v312_v39 = vmax.bf16 %v299_v33, %v254_v22  ;;  %v313_v40 = vmax.bf16 %v300_v34, %v255_v23  ;;  %v2226_v51 = vld [vmem:[%s3354_s9 + $0x7c] sm:$0xf]  ;;  %v2238_v52 = vld [vmem:[%s3354_s9 + $0xac] sm:$0xf]  ;;  %s2848_s11 = smul.u32 1280, %s3159_s15 }
  0x66   : > { %2510 = vmatprep.subr.bf16.mxu0 %v3173_v0  ;;  %2546 = vmatprep.subr.bf16.mxu1 %v3173_v0  ;;  %v314_v41 = vmax.bf16 %v301_v35, %v256_v24  ;;  %v230_v43 = vld [vmem:[%s3354_s9 + $0x14] sm:$0xf]  ;;  %v315_v44 = vmax.bf16 %v302_v37, %v257_v28  ;;  %v2212_v45 = vld [vmem:[%s3354_s9 + $0x44] sm:$0xf]  ;;  %v2239_v53 = vld [vmem:[%s3354_s9 + $0xb0] sm:$0xf]  ;;  %v303_v56 = vmax.bf16 %v2238_v52, %v2225_v47 }
  0x67   : > { %v2376_v48 = vcombine.low %v312_v39, %v313_v40  ;;  %v258_v49 = vmax.bf16 %v2212_v45, %v229_v42  ;;  %v259_v50 = vmax.bf16 %v2213_v46, %v230_v43  ;;  %v2942_v54 = vld [vmem:[#allocation6 + $0x78] sm:$0xff]   ;;  %v304_v57 = vmax.bf16 %v2239_v53, %v2226_v51  ;;  %v2215_v2 = vld [vmem:[%s3354_s9 + $0x50] sm:$0xf]  ;;  %v2227_v4 = vld [vmem:[%s3354_s9 + $0x80] sm:$0xf]  ;;  %s2095_s7 = sshll.u32 %s3747_s10, 4  ;;  %s3775_s19 = scalar_lea.hbm %s3831_s3, %s2848_s11  ;;  %s3777_s7 = int_to_ptr.vmem [resolvable:$true] %s2095_s7 }
  0x68   : > { %v2377_v55 = vcombine.low %v314_v41, %v315_v44  ;;  %v2943_v58 = vld [vmem:[#allocation6 + $0x38] sm:$0xff]   ;;  %v2228_v5 = vld [vmem:[%s3354_s9 + $0x84] sm:$0xf]  ;;  %v2951_v22 = vld [vmem:[#allocation6 + $0xc8] sm:$0xff]   ;;  %s2080_s15 = scalar_lea.sflag [#allocation5], %s3350_s25  ;;  %s3081_s30 = scalar_lea.vmem %s3777_s7, 1280 }
  0x69   : > { %2511 = vmatpush3.bf16.msra.mxu0 %v2934_v7  ;;  %2547 = vmatpush3.bf16.msra.mxu1 %v2935_v8  ;;  %2350 = vst [vmem:[#allocation2] sm:$0xff] %v2376_v48   ;;  %v316_v59 = vmax.bf16 %v303_v56, %v258_v49  ;;  %v317_v60 = vmax.bf16 %v304_v57, %v259_v50  ;;  %v231_v61 = vld [vmem:[%s3354_s9 + $0x18] sm:$0xf]  ;;  %v232_v62 = vld [vmem:[%s3354_s9 + $0x1c] sm:$0xf]  ;;  %v2946_v28 = vld [vmem:[#allocation6 + $0x80] sm:$0xff]   ;;  %p3082_p4 = scmp.ne.s32.totalorder %s3777_s7, %s3081_s30 }
  0x6a   : > { %2512 = vmatprep.subr.bf16.mxu0 %v3173_v0  ;;  %2548 = vmatprep.subr.bf16.mxu1 %v3173_v0  ;;  %2378 = vst [vmem:[#allocation2 + $0x8] sm:$0xff] %v2377_v55   ;;  %v2214_v63 = vld [vmem:[%s3354_s9 + $0x4c] sm:$0xf]  ;;  %v261_v6 = vmax.bf16 %v2215_v2, %v232_v62  ;;  %v2240_v7 = vld [vmem:[%s3354_s9 + $0xb4] sm:$0xf]  ;;  %s3175_s21 = smov [#allocation8]  }
  0x6b   : > { %v2379_v1 = vcombine.low %v316_v59, %v317_v60  ;;  %v260_v3 = vmax.bf16 %v2214_v63, %v231_v61  ;;  %v2241_v8 = vld [vmem:[%s3354_s9 + $0xb8] sm:$0xf]  ;;  %v233_v23 = vld [vmem:[%s3354_s9 + $0x20] sm:$0xf]  ;;  %v234_v24 = vld [vmem:[%s3354_s9 + $0x24] sm:$0xf]  ;;  %p3083_p6 = pnand %p3082_p4, %p3293_p10 }
  0x6c   : > { %v2216_v25 = vld [vmem:[%s3354_s9 + $0x54] sm:$0xf]  ;;  %v2217_v31 = vld [vmem:[%s3354_s9 + $0x58] sm:$0xf]  ;;  %v2229_v33 = vld [vmem:[%s3354_s9 + $0x88] sm:$0xf] }
  0x6d   : > { %2513 = vmatpush3.bf16.msra.mxu0 %v2936_v9  ;;  %2549 = vmatpush3.bf16.msra.mxu1 %v2937_v10  ;;  %2380 = vst [vmem:[#allocation2 + $0x10] sm:$0xff] %v2379_v1   ;;  %v305_v9 = vmax.bf16 %v2240_v7, %v2227_v4  ;;  %v306_v10 = vmax.bf16 %v2241_v8, %v2228_v5  ;;  %v2242_v37 = vld [vmem:[%s3354_s9 + $0xbc] sm:$0xf]  ;;  %v2954_v43 = vld [vmem:[#allocation6 + $0xd0] sm:$0xff]   ;;  %v235_v53 = vld [vmem:[%s3354_s9 + $0x28] sm:$0xf]  ;;  %p3084_p8 = pneg %p3083_p6 }
  0x6e   : > { %2514 = vmatprep.subr.bf16.mxu0 %v3173_v0  ;;  %2550 = vmatprep.subr.bf16.mxu1 %v3173_v0  ;;  %v262_v32 = vmax.bf16 %v2216_v25, %v233_v23  ;;  %v263_v35 = vmax.bf16 %v2217_v31, %v234_v24  ;;  %v307_v40 = vmax.bf16 %v2242_v37, %v2229_v33  ;;  %v2947_v44 = vld [vmem:[#allocation6 + $0x88] sm:$0xff]   ;;  %v2956_v52 = vld [vmem:[#allocation6 + $0xd8] sm:$0xff]   ;;  %v2219_v56 = vld [vmem:[%s3354_s9 + $0x60] sm:$0xf]  ;;  %s3085_s27 = sshll.u32 %s3175_s21, 4  ;;  %s3086_s27 = int_to_ptr.vmem [resolvable:$false] %s3085_s27 }
  0x6f   : > { %v318_v14 = vmax.bf16 %v305_v9, %v260_v3  ;;  %v2218_v55 = vld [vmem:[%s3354_s9 + $0x5c] sm:$0xf]  ;;  %v2231_v57 = vld [vmem:[%s3354_s9 + $0x90] sm:$0xf]  ;;  %v2232_v63 = vld [vmem:[%s3354_s9 + $0x94] sm:$0xf]  ;;  %p3088_p12 = scmp.lt.s32.totalorder %s3777_s7, %s3086_s27 }
  0x70   : > { %v338_v12 = vld [vmem:[#allocation2] sm:$0xf]  ;;  %v3418_v13 = vld [vmem:[#allocation2 + $0x4] sm:$0xf]  ;;  %v320_v45 = vmax.bf16 %v307_v40, %v262_v32  ;;  %v264_v61 = vmax.bf16 %v2218_v55, %v235_v53  ;;  %v2244_v1 = vld [vmem:[%s3354_s9 + $0xc4] sm:$0xf] }
  0x71   : > { %2515 = vmatpush3.bf16.msra.mxu0 %v2938_v11  ;;  %2551 = vmatpush3.bf16.msra.mxu1 %v2939_v15  ;;  %v2949_v11 = vld [vmem:[#allocation6 + $0xc0] sm:$0xff]   ;;  %v319_v15 = vmax.bf16 %v306_v10, %v261_v6  ;;  %v2247_v16 = vcombine.low %v338_v12, %v3418_v13  ;;  %v3421_v17 = vld [vmem:[#allocation2 + $0x8] sm:$0xff]   ;;  %v309_v3 = vmax.bf16 %v2244_v1, %v2231_v57  ;;  %v876_v25 = vld [vmem:[#allocation2 + $0x4] sm:$0xe]  ;;  %s3087_s4 = scalar_lea.vmem %s3086_s27, 2560 }
  0x72   : > { %2516 = vmatprep.subr.bf16.mxu0 %v3173_v0  ;;  %2552 = vmatprep.subr.bf16.mxu1 %v3173_v0  ;;  %v419_v21 = vshll.u32 %v3421_v17, 16  ;;  %v423_v30 = vshrl.u32 %v3421_v17, 16  ;;  %v2950_v59 = vld [vmem:[#allocation6 + $0x90] sm:$0xff]   ;;  %v2245_v2 = vld [vmem:[%s3354_s9 + $0xc8] sm:$0xf]  ;;  %v2958_v4 = vld [vmem:[#allocation6 + $0xe0] sm:$0xff]   ;;  %p3089_p13 = scmp.lt.s32.totalorder %s3087_s4, %s3081_s30 }
  0x73   : > { %v2381_v18 = vcombine.low %v318_v14, %v319_v15  ;;  %v412_v19 = vshrl.u32 %v2247_v16, 16  ;;  %v414_v20 = vshll.u32 %v2247_v16, 16  ;;  %v310_v5 = vmax.bf16 %v2245_v2, %v2232_v63  ;;  %v2953_v9 = vld [vmem:[#allocation6 + $0x98] sm:$0xff]   ;;  %v2955_v15 = vld [vmem:[#allocation6 + $0xa0] sm:$0xff]   ;;  %v2983_v2 = vld [vmem:[#allocation6 + $0x168] sm:$0xff]  }
  0x74   : > { %v421_v27 = vrot.slane %v419_v21, 1  ;;  %v3430_v29 = vld [vmem:[#allocation2 + $0x10] sm:$0xff]   ;;  %v322_v6 = vmax.bf16 %v309_v3, %v264_v61  ;;  %v2959_v21 = vld [vmem:[#allocation6 + $0xa8] sm:$0xff]   ;;  %p3090_p0 = por %p3089_p13, %p3088_p12 }
  0x75   : > { %2517 = vmatpush3.bf16.msra.mxu0 %v2940_v36  ;;  %2553 = vmatpush3.bf16.msra.mxu1 %v2941_v38  ;;  %2382 = vst [vmem:[#allocation2 + $0x18] sm:$0xff] %v2381_v18   ;;  %v416_v26 = vrot.slane %v414_v20, 1  ;;  %v2230_v36 = vld [vmem:[%s3354_s9 + $0x8c] sm:$0xf]  ;;  %v2243_v38 = vld [vmem:[%s3354_s9 + $0xc0] sm:$0xf] }
  0x76   : > { %2518 = vmatprep.subr.bf16.mxu0 %v3173_v0  ;;  %2554 = vmatprep.subr.bf16.mxu1 %v3173_v0  ;;  %v427_v39 = vshll.u32 %v3430_v29, 16  ;;  %v308_v41 = vmax.bf16 %v2243_v38, %v2230_v36  ;;  %v425_v47 = vor.u32 %v423_v30, %v421_v27  ;;  %v431_v51 = vshrl.u32 %v3430_v29, 16  ;;  %v2963_v20 = vld [vmem:[#allocation6 + $0xf0] sm:$0xff]   ;;  %v2965_v24 = vld [vmem:[#allocation6 + $0xf8] sm:$0xff]   ;;  %v707_v38 = vld [vmem:[#allocation2] sm:$0xe]  ;;  %p3091_p5 = pnand %p3090_p0, %p3084_p8 }
  0x77   : > { %v417_v34 = vor.u32 %v416_v26, %v412_v19  ;;  %v3483_v26 = vld [vmem:[#allocation2 + $0x8] sm:$0xf]  ;;  %v3492_v33 = vld [vmem:[#allocation2 + $0xc] sm:$0xff]   ;;  %v732_v55 = vrot.slane %v3430_v29, 1  ;;  %v2981_v61 = vld [vmem:[#allocation6 + $0x160] sm:$0xff]  }
  0x78   : > { %v321_v46 = vmax.bf16 %v308_v41, %v263_v35  ;;  %v429_v48 = vrot.slane %v427_v39, 1  ;;  %v2961_v30 = vld [vmem:[#allocation6 + $0xb0] sm:$0xff]   ;;  %v2964_v37 = vld [vmem:[#allocation6 + $0xb8] sm:$0xff]   ;;  %v933_v40 = vrot.slane %v3492_v33, 1 }
  0x79   : > { %2519 = vmatpush3.bf16.msra.mxu0 %v2942_v54  ;;  %2555 = vmatpush3.bf16.msra.mxu1 %v2943_v58  ;;  %v422_v42 = vsel %vm410_vm1, %v417_v34, %v421_v27  ;;  %v236_v54 = vld [vmem:[%s3354_s9 + $0x2c] sm:$0xf]  ;;  %v3495_v34 = vcombine.low %v876_v25, %v3483_v26  ;;  %v1313_v25 = vrot.slane %v3492_v33, 2 }
  0x7a   : > { %2576 = vmatprep.subr.bf16.mxu0 %v3173_v0  ;;  %2612 = vmatprep.subr.bf16.mxu1 %v3173_v0  ;;  %v2383_v50 = vcombine.low %v320_v45, %v321_v46  ;;  %v430_v58 = vsel %vm410_vm1, %v425_v47, %v429_v48  ;;  %v265_v62 = vmax.bf16 %v2219_v56, %v236_v54  ;;  %v2972_v45 = vld [vmem:[#allocation6 + $0x140] sm:$0xff]   ;;  %v730_v47 = vrot.slane %v3421_v17, 1  ;;  %v2977_v54 = vld [vmem:[#allocation6 + $0x150] sm:$0xff]   ;;  %v2979_v57 = vld [vmem:[#allocation6 + $0x158] sm:$0xff]  }
  0x7b   : > { %v433_v7 = vor.u32 %v431_v51, %v429_v48  ;;  %v932_v39 = vrot.slane %v3495_v34, 1  ;;  %v2974_v48 = vld [vmem:[#allocation6 + $0x148] sm:$0xff]   ;;  %v2969_v51 = vld [vmem:[#allocation6 + $0x100] sm:$0xff]   ;;  %v2976_v63 = vld [vmem:[#allocation6 + $0x118] sm:$0xff]  }
  0x7c   : > { %2557 = vmatmul.mubr.bf16.vlgmr.msra.gmra.mrb[0].mxu1 %v2247_v16  ;;  %2521 = vmatmul.mubr.bf16.vlgmr.msra.gmra.mrb[0].mxu0 %v422_v42  ;;  %v3443_v49 = vld [vmem:[#allocation2 + $0x18] sm:$0xff]   ;;  %2384 = vst [vmem:[#allocation2 + $0x20] sm:$0xff] %v2383_v50   ;;  %v323_v10 = vmax.bf16 %v310_v5, %v265_v62  ;;  %v2269_v42 = vcombine.low %v707_v38, %v3418_v13 }
  0x7d   : > { %2560 = vmatprep.mubr.msk.bf16.mxu1 %vm3174_vm0, %v3173_v0  ;;  %2613 = vmatpush3.bf16.msra.mxu1 %v2949_v11  ;;  %v435_v60 = vshll.u32 %v3443_v49, 16  ;;  %v2960_v11 = vld [vmem:[#allocation6 + $0xe8] sm:$0xff]   ;;  %v439_v18 = vshrl.u32 %v3443_v49, 16  ;;  %v734_v62 = vrot.slane %v3443_v49, 1 }
  0x7e   : > { %2614 = vmatprep.subr.bf16.mxu1 %v3173_v0  ;;  %2577 = vmatpush3.bf16.msra.mxu0 %v2946_v28  ;;  %v2385_v14 = vcombine.low %v322_v6, %v323_v10  ;;  %v729_v46 = vrot.slane %v2269_v42, 1  ;;  %v2986_v6 = vld [vmem:[#allocation6 + $0x170] sm:$0xff]  }
  0x7f   : > { %2524 = vmatprep.mubr.msk.bf16.mxu0 %vm3174_vm0, %v3173_v0  ;;  %2578 = vmatprep.subr.bf16.mxu0 %v3173_v0  ;;  %v437_v8 = vrot.slane %v435_v60, 1  ;;  %v735_v3 = vsel %vm728_vm2, %v732_v55, %v734_v62 }
  0x80   : > { %2386 = vst [vmem:[#allocation2 + $0x28] sm:$0xff] %v2385_v14   ;;  %v731_v50 = vsel %vm728_vm2, %v729_v46, %v730_v47 }
  0x81   : > { %2615 = vmatpush3.bf16.msra.mxu1 %v2951_v22  ;;  %v438_v16 = vsel %vm410_vm1, %v433_v7, %v437_v8  ;;  %v441_v22 = vor.u32 %v439_v18, %v437_v8  ;;  %v2982_v8 = vld [vmem:[#allocation6 + $0x128] sm:$0xff]  }
  0x82   : > { %2616 = vmatprep.subr.bf16.mxu1 %v3173_v0  ;;  %2579 = vmatpush3.bf16.msra.mxu0 %v2947_v44  ;;  %v934_v44 = vsel %vm728_vm2, %v932_v39, %v933_v40 }
  0x83   : > { %2580 = vmatprep.subr.bf16.mxu0 %v3173_v0  ;;  %v3469_v12 = vld [vmem:[#allocation2 + $0x20] sm:$0xff]  }
  0x84   : > { %2561 = vmatmul.mubr.bf16.gmra.mrb[4].mxu1 %v3421_v17  ;;  %2525 = vmatmul.mubr.bf16.gmra.mrb[4].mxu0 %v430_v58  ;;  %v443_v19 = vshll.u32 %v3469_v12, 16  ;;  %v447_v31 = vshrl.u32 %v3469_v12, 16  ;;  %v2970_v17 = vld [vmem:[#allocation6 + $0x108] sm:$0xff]   ;;  %v733_v58 = vsel %vm728_vm2, %v730_v47, %v732_v55  ;;  %v736_v7 = vrot.slane %v3469_v12, 1 }
  0x85   : > { %2564 = vmatprep.mubr.msk.bf16.mxu1 %vm3174_vm0, %v3173_v0  ;;  %2617 = vmatpush3.bf16.msra.mxu1 %v2954_v43  ;;  %v3509_v43 = vld [vmem:[#allocation2 + $0x14] sm:$0xff]   ;;  %v2994_v47 = vld [vmem:[#allocation6 + $0x1c8] sm:$0xff]  }
  0x86   : > { %2618 = vmatprep.subr.bf16.mxu1 %v3173_v0  ;;  %2581 = vmatpush3.bf16.msra.mxu0 %v2950_v59  ;;  %v445_v23 = vrot.slane %v443_v19, 1  ;;  %v935_v13 = vrot.slane %v3509_v43, 1  ;;  %v2973_v59 = vld [vmem:[#allocation6 + $0x110] sm:$0xff]   ;;  %v737_v14 = vsel %vm728_vm2, %v734_v62, %v736_v7  ;;  %v1315_v46 = vrot.slane %v3509_v43, 2 }
  0x87   : > { %2528 = vmatprep.mubr.msk.bf16.mxu0 %vm3174_vm0, %v3173_v0  ;;  %2582 = vmatprep.subr.bf16.mxu0 %v3173_v0  ;;  %v3485_v27 = vld [vmem:[#allocation2 + $0x28] ss:$0 sps:$4 sm:$0x11]   ;;  %v2985_v5 = vld [vmem:[#allocation2 + $0x2c] ss:$0 sps:$4 sm:$0x11]  }
  0x88   : > { %v446_v28 = vsel %vm410_vm1, %v441_v22, %v445_v23  ;;  %v451_v32 = vshll.u32 %v3485_v27, 16  ;;  %v449_v35 = vor.u32 %v447_v31, %v445_v23  ;;  %v936_v53 = vsel %vm728_vm2, %v933_v40, %v935_v13  ;;  %v3535_v60 = vld [vmem:[#allocation2 + $0x24] sm:$0xff]   ;;  %v2987_v22 = vld [vmem:[#allocation6 + $0x138] sm:$0xff]   ;;  %v2992_v40 = vld [vmem:[#allocation6 + $0x1c0] sm:$0xff]  }
  0x89   : > { %2619 = vmatpush3.bf16.msra.mxu1 %v2956_v52  ;;  %v3520_v52 = vld [vmem:[#allocation2 + $0x1c] sm:$0xff]   ;;  %v939_v1 = vrot.slane %v3535_v60, 1  ;;  %v941_v10 = vrot.slane %v2985_v5, 1  ;;  %v738_v18 = vrot.slane %v3485_v27, 1  ;;  %v1113_v23 = vshll.u32 %v3492_v33, 16 }
  0x8a   : > { %2620 = vmatprep.subr.bf16.mxu1 %v3173_v0  ;;  %2583 = vmatpush3.bf16.msra.mxu0 %v2953_v9  ;;  %v453_v36 = vrot.slane %v451_v32, 1  ;;  %v937_v56 = vrot.slane %v3520_v52, 1  ;;  %v1290_v9 = vld [vmem:[#allocation2 + $0x4] sm:$0xc]  ;;  %v2220_v27 = vld [vmem:[%s3354_s9 + $0x64] sm:$0xf] }
  0x8b   : > { %2584 = vmatprep.subr.bf16.mxu0 %v3173_v0  ;;  %v942_v19 = vsel %vm728_vm2, %v939_v1, %v941_v10  ;;  %v2246_v31 = vld [vmem:[%s3354_s9 + $0xcc] sm:$0xf]  ;;  %v1128_v55 = vshrl.u32 %v3520_v52, 16 }
  0x8c   : > { %2565 = vmatmul.mubr.bf16.gmra.mrb[8].mxu1 %v3430_v29  ;;  %2529 = vmatmul.mubr.bf16.gmra.mrb[8].mxu0 %v438_v16  ;;  %v454_v41 = vsel %vm410_vm1, %v449_v35, %v453_v36  ;;  %v938_v29 = vsel %vm728_vm2, %v935_v13, %v937_v56  ;;  %v2301_v16 = vcombine.low %v1290_v9, %v3483_v26  ;;  %v237_v26 = vld [vmem:[%s3354_s9 + $0x30] sm:$0xf]  ;;  %v3001_v5 = vld [vmem:[#allocation6 + $0x1e8] sm:$0xff]  }
  0x8d   : > { %2568 = vmatprep.mubr.msk.bf16.mxu1 %vm3174_vm0, %v3173_v0  ;;  %2621 = vmatpush3.bf16.msra.mxu1 %v2958_v4  ;;  %v2978_v4 = vld [vmem:[#allocation6 + $0x120] sm:$0xff]   ;;  %v739_v35 = vsel %vm728_vm2, %v736_v7, %v738_v18  ;;  %v3613_v7 = vld [vmem:[#allocation2 + $0xc] sm:$0xf] }
  0x8e   : > { %2622 = vmatprep.subr.bf16.mxu1 %v3173_v0  ;;  %2585 = vmatpush3.bf16.msra.mxu0 %v2955_v15  ;;  %v2984_v15 = vld [vmem:[#allocation6 + $0x130] sm:$0xff]   ;;  %v2997_v9 = vld [vmem:[#allocation6 + $0x1a0] sm:$0xff]  }
  0x8f   : > { %2532 = vmatprep.mubr.msk.bf16.mxu0 %vm3174_vm0, %v3173_v0  ;;  %2586 = vmatprep.subr.bf16.mxu0 %v3173_v0 }
  0x91   : > { %2623 = vmatpush3.bf16.msra.mxu1 %v2960_v11  ;;  %v2988_v11 = vld [vmem:[#allocation6 + $0x178] sm:$0xff]  }
  0x92   : > { %2624 = vmatprep.subr.bf16.mxu1 %v3173_v0  ;;  %2587 = vmatpush3.bf16.msra.mxu0 %v2959_v21  ;;  %v1110_v21 = vshrl.u32 %v3492_v33, 16  ;;  %v1115_v33 = vrot.slane %v1113_v23, 2  ;;  %v3006_v23 = vld [vmem:[#allocation6 + $0x1f8] sm:$0xff]  }
  0x93   : > { %2588 = vmatprep.subr.bf16.mxu0 %v3173_v0 }
  0x94   : > { %2569 = vmatmul.mubr.bf16.gmra.mrb[12].mxu1 %v3443_v49  ;;  %2533 = vmatmul.mubr.bf16.gmra.mrb[12].mxu0 %v446_v28  ;;  %v940_v49 = vsel %vm728_vm2, %v937_v56, %v939_v1  ;;  %v2233_v28 = vld [vmem:[%s3354_s9 + $0x98] sm:$0xf]  ;;  %v1131_v56 = vshll.u32 %v3520_v52, 16  ;;  %v2999_v1 = vld [vmem:[#allocation6 + $0x1e0] sm:$0xff]  }
  0x95   : > { %2572 = vmatprep.mubr.msk.bf16.mxu1 %vm3174_vm0, %v3173_v0  ;;  %2625 = vmatpush3.bf16.msra.mxu1 %v2963_v20  ;;  %v1105_v20 = vshll.u32 %v3495_v34, 16 }
  0x96   : > { %2626 = vmatprep.subr.bf16.mxu1 %v3173_v0  ;;  %2536 = vmatprep.mubr.msk.bf16.mxu0 %vm3174_vm0, %v3173_v0  ;;  %v1133_v62 = vrot.slane %v1131_v56, 2 }
  0x97   : > { %2589 = vmatpush3.bf16.msra.mxu0 %v2961_v30  ;;  %v266_v30 = vmax.bf16 %v2220_v27, %v237_v26  ;;  %v1107_v36 = vrot.slane %v1105_v20, 2 }
  0x98   : > { %2590 = vmatprep.subr.bf16.mxu0 %v3173_v0 }
  0x99   : > { %2627 = vmatpush3.bf16.msra.mxu1 %v2965_v24  ;;  %v1312_v24 = vrot.slane %v2301_v16, 2 }
  0x9a   : > { %2684 = vmatprep.subr.bf16.mxu1 %v3173_v0 }
  0x9b   : > { %2591 = vmatpush3.bf16.msra.mxu0 %v2964_v37  ;;  %v1112_v37 = vrot.slane %v1110_v21, 1  ;;  %v1314_v39 = vsel %vm1311_vm3, %v1312_v24, %v1313_v25 }
  0x9c   : > { %2573 = vmatmul.mubr.bf16.gmra.mrb[16].mxu1 %v3469_v12  ;;  %2648 = vmatprep.subr.bf16.mxu0 %v3173_v0  ;;  %v1102_v12 = vshrl.u32 %v3495_v34, 16  ;;  %v311_v34 = vmax.bf16 %v2246_v31, %v2233_v28 }
  0x9d   : > { %2628 = vmatprep.mubr.msk.bf16.mxu1 %vm3174_vm0, %v3173_v0  ;;  %2537 = vmatmul.mubr.bf16.gmra.mrb[16].mxu0 %v454_v41  ;;  %v1116_v42 = vor.u32 %v1115_v33, %v1112_v37 }
  0x9e   : > { %2592 = vmatprep.mubr.msk.bf16.mxu0 %vm3174_vm0, %v3173_v0  ;;  %v1104_v32 = vrot.slane %v1102_v12, 1  ;;  %v324_v38 = vmax.bf16 %v311_v34, %v266_v30  ;;  %v3621_v12 = vld [vmem:[#allocation2 + $0x10] sm:$0xff]   ;;  %v3002_v30 = vld [vmem:[#allocation6 + $0x1b0] sm:$0xff]  }
  0x9f   : > { %v1693_v26 = vshrl.u32 %v3621_v12, 16  ;;  %v1696_v27 = vshll.u32 %v3621_v12, 16 }
  0xa0   : > { %337 = vst [vmem:[#allocation2 + $0x30] sm:$0xf] %v324_v38  ;;  %v1108_v41 = vor.u32 %v1107_v36, %v1104_v32  ;;  %v3637_v38 = vld [vmem:[#allocation2 + $0x18] sm:$0xff]  }
  0xa1   : > { %v1695_v37 = vrot.slane %v1693_v26, 2  ;;  %v1698_v33 = vrot.slane %v1696_v27, 3 }
  0xa2   : > { %v1117_v13 = vsel %vm1100_vm4, %v1108_v41, %v1116_v42 }
  0xa4   : > { %2629 = vmatmul.mubr.bf16.vlgmr.msra.gmra.mrb[20].mxu1 %v934_v44  ;;  %v1119_v44 = vshrl.u32 %v3509_v43, 16 }
  0xa5   : > { %2632 = vmatprep.mubr.msk.bf16.mxu1 %vm3174_vm0, %v3173_v0  ;;  %2685 = vmatpush3.bf16.msra.mxu1 %v2972_v45  ;;  %v1122_v45 = vshll.u32 %v3509_v43, 16 }
  0xa6   : > { %2686 = vmatprep.subr.bf16.mxu1 %v3173_v0  ;;  %2593 = vmatmul.mubr.bf16.vlgmr.msra.gmra.mrb[20].mxu0 %v731_v50  ;;  %v1121_v50 = vrot.slane %v1119_v44, 1  ;;  %v1702_v44 = vshrl.u32 %v3637_v38, 16 }
  0xa7   : > { %2649 = vmatpush3.bf16.msra.mxu0 %v2969_v51  ;;  %2596 = vmatprep.mubr.msk.bf16.mxu0 %vm3174_vm0, %v3173_v0  ;;  %v1124_v51 = vrot.slane %v1122_v45, 2  ;;  %v1705_v45 = vshll.u32 %v3637_v38, 16  ;;  %v3019_v26 = vld [vmem:[#allocation2 + $0x30] ss:$0 sps:$4 sm:$0x33]  }
  0xa8   : > { %2650 = vmatprep.subr.bf16.mxu0 %v3173_v0 }
  0xa9   : > { %2687 = vmatpush3.bf16.msra.mxu1 %v2974_v48  ;;  %v2990_v48 = vld [vmem:[#allocation6 + $0x180] sm:$0xff]   ;;  %v1125_v43 = vor.u32 %v1124_v51, %v1121_v50  ;;  %v1707_v50 = vrot.slane %v1705_v45, 3  ;;  %v3650_v51 = vld [vmem:[#allocation2 + $0x20] sm:$0xff]  }
  0xaa   : > { %2688 = vmatprep.subr.bf16.mxu1 %v3173_v0  ;;  %v1714_v56 = vshll.u32 %v3650_v51, 16 }
  0xab   : > { %2651 = vmatpush3.bf16.msra.mxu0 %v2970_v17  ;;  %v2991_v17 = vld [vmem:[#allocation6 + $0x188] sm:$0xff]  }
  0xac   : > { %2633 = vmatmul.mubr.bf16.gmra.mrb[24].mxu1 %v936_v53  ;;  %2652 = vmatprep.subr.bf16.mxu0 %v3173_v0  ;;  %v1316_v53 = vsel %vm1311_vm3, %v1313_v25, %v1315_v46 }
  0xad   : > { %2636 = vmatprep.mubr.msk.bf16.mxu1 %vm3174_vm0, %v3173_v0  ;;  %2689 = vmatpush3.bf16.msra.mxu1 %v2977_v54  ;;  %v2996_v54 = vld [vmem:[#allocation6 + $0x1d0] sm:$0xff]  }
  0xae   : > { %2690 = vmatprep.subr.bf16.mxu1 %v3173_v0  ;;  %2597 = vmatmul.mubr.bf16.gmra.mrb[24].mxu0 %v733_v58  ;;  %v2998_v58 = vld [vmem:[#allocation6 + $0x1d8] sm:$0xff]  }
  0xaf   : > { %2653 = vmatpush3.bf16.msra.mxu0 %v2973_v59  ;;  %2600 = vmatprep.mubr.msk.bf16.mxu0 %vm3174_vm0, %v3173_v0  ;;  %v1126_v59 = vsel %vm1100_vm4, %v1116_v42, %v1125_v43  ;;  %v1699_v42 = vor.u32 %v1698_v33, %v1695_v37  ;;  %v1896_v33 = vrot.slane %v3621_v12, 3 }
  0xb0   : > { %2654 = vmatprep.subr.bf16.mxu0 %v3173_v0 }
  0xb1   : > { %2691 = vmatpush3.bf16.msra.mxu1 %v2979_v57  ;;  %v1317_v57 = vrot.slane %v3520_v52, 2 }
  0xb2   : > { %2692 = vmatprep.subr.bf16.mxu1 %v3173_v0 }
  0xb3   : > { %2655 = vmatpush3.bf16.msra.mxu0 %v2976_v63  ;;  %v1318_v63 = vsel %vm1311_vm3, %v1315_v46, %v1317_v57 }
  0xb4   : > { %2637 = vmatmul.mubr.bf16.gmra.mrb[28].mxu1 %v938_v29  ;;  %2656 = vmatprep.subr.bf16.mxu0 %v3173_v0  ;;  %v2993_v29 = vld [vmem:[#allocation6 + $0x190] sm:$0xff]  }
  0xb5   : > { %2640 = vmatprep.mubr.msk.bf16.mxu1 %vm3174_vm0, %v3173_v0  ;;  %2693 = vmatpush3.bf16.msra.mxu1 %v2981_v61  ;;  %v1130_v61 = vrot.slane %v1128_v55, 1  ;;  %v1711_v55 = vshrl.u32 %v3650_v51, 16 }
  0xb6   : > { %2694 = vmatprep.subr.bf16.mxu1 %v3173_v0  ;;  %2601 = vmatmul.mubr.bf16.gmra.mrb[28].mxu0 %v735_v3  ;;  %v1137_v3 = vshrl.u32 %v3535_v60, 16 }
  0xb7   : > { %2657 = vmatpush3.bf16.msra.mxu0 %v2978_v4  ;;  %2604 = vmatprep.mubr.msk.bf16.mxu0 %vm3174_vm0, %v3173_v0  ;;  %v1134_v52 = vor.u32 %v1133_v62, %v1130_v61  ;;  %v1140_v4 = vshll.u32 %v3535_v60, 16  ;;  %v1716_v61 = vrot.slane %v1714_v56, 3  ;;  %v3663_v62 = vld [vmem:[#allocation2 + $0x28] sm:$0xff]  }
  0xb8   : > { %2658 = vmatprep.subr.bf16.mxu0 %v3173_v0  ;;  %v1139_v10 = vrot.slane %v1137_v3, 1  ;;  %v1723_v3 = vshll.u32 %v3663_v62, 16 }
  0xb9   : > { %2695 = vmatpush3.bf16.msra.mxu1 %v2983_v2  ;;  %v2995_v2 = vld [vmem:[#allocation6 + $0x198] sm:$0xff]  }
  0xba   : > { %2696 = vmatprep.subr.bf16.mxu1 %v3173_v0 }
  0xbb   : > { %2659 = vmatpush3.bf16.msra.mxu0 %v2982_v8  ;;  %v1135_v8 = vsel %vm1100_vm4, %v1125_v43, %v1134_v52 }
  0xbc   : > { %2641 = vmatmul.mubr.bf16.gmra.mrb[32].mxu1 %v940_v49  ;;  %2660 = vmatprep.subr.bf16.mxu0 %v3173_v0  ;;  %v1319_v49 = vrot.slane %v3535_v60, 2  ;;  %v3004_v60 = vld [vmem:[#allocation6 + $0x1f0] sm:$0xff]  }
  0xbd   : > { %2644 = vmatprep.mubr.msk.bf16.mxu1 %vm3174_vm0, %v3173_v0  ;;  %2697 = vmatpush3.bf16.msra.mxu1 %v2986_v6  ;;  %v1459_v6 = vld [vmem:[#allocation2 + $0x8] sm:$0xc] }
  0xbe   : > { %2698 = vmatprep.subr.bf16.mxu1 %v3173_v0  ;;  %2605 = vmatmul.mubr.bf16.gmra.mrb[32].mxu0 %v737_v14  ;;  %v3003_v14 = vld [vmem:[#allocation2 + $0x2c] ss:$0 sps:$4 sm:$0x33]   ;;  %v3619_v16 = vcombine.low %v1459_v6, %v3613_v7 }
  0xbf   : > { %2608 = vmatprep.mubr.msk.bf16.mxu0 %vm3174_vm0, %v3173_v0  ;;  %2661 = vmatpush3.bf16.msra.mxu0 %v2984_v15  ;;  %v1320_v15 = vsel %vm1311_vm3, %v1317_v57, %v1319_v49  ;;  %v1146_v20 = vshrl.u32 %v3003_v14, 16  ;;  %v1149_v21 = vshll.u32 %v3003_v14, 16 }
  0xc0   : > { %2662 = vmatprep.subr.bf16.mxu0 %v3173_v0  ;;  %v1685_v24 = vshrl.u32 %v3619_v16, 16  ;;  %v1688_v25 = vshll.u32 %v3619_v16, 16 }
  0xc1   : > { %2699 = vmatpush3.bf16.msra.mxu1 %v2988_v11  ;;  %v1142_v11 = vrot.slane %v1140_v4, 2  ;;  %v1148_v31 = vrot.slane %v1146_v20, 1  ;;  %v1151_v32 = vrot.slane %v1149_v21, 2 }
  0xc2   : > { %2756 = vmatprep.subr.bf16.mxu1 %v3173_v0  ;;  %v1690_v36 = vrot.slane %v1688_v25, 3 }
  0xc3   : > { %2663 = vmatpush3.bf16.msra.mxu0 %v2987_v22  ;;  %v1143_v18 = vor.u32 %v1142_v11, %v1139_v10  ;;  %v1321_v22 = vrot.slane %v3003_v14, 2  ;;  %v1520_v10 = vrot.slane %v3650_v51, 2  ;;  %v3017_v14 = vld [vmem:[#allocation6 + $0x228] sm:$0xff]  }
  0xc4   : > { %2645 = vmatmul.mubr.bf16.gmra.mrb[36].mxu1 %v942_v19  ;;  %2720 = vmatprep.subr.bf16.mxu0 %v3173_v0  ;;  %v3000_v19 = vld [vmem:[#allocation6 + $0x1a8] sm:$0xff]  }
  0xc5   : > { %2700 = vmatprep.mubr.msk.bf16.mxu1 %vm3174_vm0, %v3173_v0  ;;  %v1144_v28 = vsel %vm1100_vm4, %v1134_v52, %v1143_v18  ;;  %v1322_v34 = vsel %vm1311_vm3, %v1319_v49, %v1321_v22  ;;  %v3014_v52 = vld [vmem:[#allocation6 + $0x218] sm:$0xff]   ;;  %v1522_v22 = vrot.slane %v3663_v62, 2 }
  0xc6   : > { %2609 = vmatmul.mubr.bf16.gmra.mrb[36].mxu0 %v739_v35  ;;  %v1687_v35 = vrot.slane %v1685_v24, 2  ;;  %v3021_v24 = vld [vmem:[#allocation6 + $0x238] sm:$0xff]  }
  0xc7   : > { %2664 = vmatprep.mubr.msk.bf16.mxu0 %vm3174_vm0, %v3173_v0  ;;  %v1523_v25 = vsel %vm1311_vm3, %v1520_v10, %v1522_v22 }
  0xc8   : > { %v1691_v41 = vor.u32 %v1690_v36, %v1687_v35 }
  0xcc   : > { %2701 = vmatmul.mubr.bf16.vlgmr.msra.gmra.mrb[40].mxu1 %v1314_v39  ;;  %v1152_v39 = vor.u32 %v1151_v32, %v1148_v31  ;;  %v1900_v31 = vrot.slane %v3650_v51, 3  ;;  %v1902_v32 = vrot.slane %v3663_v62, 3 }
  0xcd   : > { %2704 = vmatprep.mubr.msk.bf16.mxu1 %vm3174_vm0, %v3173_v0  ;;  %2757 = vmatpush3.bf16.msra.mxu1 %v2992_v40  ;;  %v3005_v40 = vld [vmem:[#allocation6 + $0x1b8] sm:$0xff]  }
  0xce   : > { %2758 = vmatprep.subr.bf16.mxu1 %v3173_v0  ;;  %2665 = vmatmul.mubr.bf16.vlgmr.msra.gmra.mrb[40].mxu0 %v1117_v13  ;;  %v1153_v46 = vsel %vm1100_vm4, %v1143_v18, %v1152_v39  ;;  %v3009_v13 = vld [vmem:[#allocation6 + $0x200] sm:$0xff]   ;;  %v1903_v36 = vsel %vm1894_vm6, %v1900_v31, %v1902_v32 }
  0xcf   : > { %2721 = vmatpush3.bf16.msra.mxu0 %v2990_v48  ;;  %2668 = vmatprep.mubr.msk.bf16.mxu0 %vm3174_vm0, %v3173_v0  ;;  %v1704_v48 = vrot.slane %v1702_v44, 2 }
  0xd0   : > { %2722 = vmatprep.subr.bf16.mxu0 %v3173_v0 }
  0xd1   : > { %2759 = vmatpush3.bf16.msra.mxu1 %v2994_v47  ;;  %v1700_v47 = vsel %vm1683_vm5, %v1691_v41, %v1699_v42  ;;  %v1708_v43 = vor.u32 %v1707_v50, %v1704_v48 }
  0xd2   : > { %2760 = vmatprep.subr.bf16.mxu1 %v3173_v0 }
  0xd3   : > { %2723 = vmatpush3.bf16.msra.mxu0 %v2991_v17  ;;  %v3010_v17 = vld [vmem:[#allocation6 + $0x208] sm:$0xff]  }
  0xd4   : > { %2705 = vmatmul.mubr.bf16.gmra.mrb[44].mxu1 %v1316_v53  ;;  %2724 = vmatprep.subr.bf16.mxu0 %v3173_v0  ;;  %v1515_v53 = vrot.slane %v3619_v16, 2 }
  0xd5   : > { %2708 = vmatprep.mubr.msk.bf16.mxu1 %vm3174_vm0, %v3173_v0  ;;  %2761 = vmatpush3.bf16.msra.mxu1 %v2996_v54  ;;  %v1516_v54 = vrot.slane %v3621_v12, 2 }
  0xd6   : > { %2762 = vmatprep.subr.bf16.mxu1 %v3173_v0  ;;  %2669 = vmatmul.mubr.bf16.gmra.mrb[44].mxu0 %v1126_v59  ;;  %v3012_v59 = vld [vmem:[#allocation6 + $0x210] sm:$0xff]  }
  0xd7   : > { %2725 = vmatpush3.bf16.msra.mxu0 %v2993_v29  ;;  %2672 = vmatprep.mubr.msk.bf16.mxu0 %vm3174_vm0, %v3173_v0  ;;  %v1517_v57 = vsel %vm1311_vm3, %v1515_v53, %v1516_v54  ;;  %v1713_v29 = vrot.slane %v1711_v55, 2 }
  0xd8   : > { %2726 = vmatprep.subr.bf16.mxu0 %v3173_v0 }
  0xd9   : > { %2763 = vmatpush3.bf16.msra.mxu1 %v2998_v58  ;;  %v1709_v58 = vsel %vm1683_vm5, %v1699_v42, %v1708_v43 }
  0xda   : > { %2764 = vmatprep.subr.bf16.mxu1 %v3173_v0 }
  0xdb   : > { %2727 = vmatpush3.bf16.msra.mxu0 %v2995_v2  ;;  %v1720_v2 = vshrl.u32 %v3663_v62, 16 }
  0xdc   : > { %2709 = vmatmul.mubr.bf16.gmra.mrb[48].mxu1 %v1318_v63  ;;  %2728 = vmatprep.subr.bf16.mxu0 %v3173_v0  ;;  %v1518_v63 = vrot.slane %v3637_v38, 2 }
  0xdd   : > { %2712 = vmatprep.mubr.msk.bf16.mxu1 %vm3174_vm0, %v3173_v0  ;;  %2765 = vmatpush3.bf16.msra.mxu1 %v2999_v1  ;;  %v1717_v1 = vor.u32 %v1716_v61, %v1713_v29  ;;  %v1722_v6 = vrot.slane %v1720_v2, 2 }
  0xde   : > { %2766 = vmatprep.subr.bf16.mxu1 %v3173_v0  ;;  %2673 = vmatmul.mubr.bf16.gmra.mrb[48].mxu0 %v1135_v8  ;;  %v1519_v4 = vsel %vm1311_vm3, %v1516_v54, %v1518_v63  ;;  %v1725_v8 = vrot.slane %v1723_v3, 3  ;;  %v1521_v16 = vsel %vm1311_vm3, %v1518_v63, %v1520_v10 }
  0xdf   : > { %2729 = vmatpush3.bf16.msra.mxu0 %v2997_v9  ;;  %2676 = vmatprep.mubr.msk.bf16.mxu0 %vm3174_vm0, %v3173_v0  ;;  %v1718_v49 = vsel %vm1683_vm5, %v1708_v43, %v1717_v1  ;;  %v3678_v9 = vld [vmem:[#allocation2 + $0x30] ss:$0 sps:$4 sm:$0x77]  }
  0xe0   : > { %2730 = vmatprep.subr.bf16.mxu0 %v3173_v0  ;;  %v1726_v11 = vor.u32 %v1725_v8, %v1722_v6  ;;  %v1904_v39 = vrot.slane %v3678_v9, 3 }
  0xe1   : > { %2767 = vmatpush3.bf16.msra.mxu1 %v3001_v5  ;;  %v3015_v5 = vld [vmem:[#allocation6 + $0x220] sm:$0xff]  }
  0xe2   : > { %2768 = vmatprep.subr.bf16.mxu1 %v3173_v0  ;;  %v1727_v18 = vsel %vm1683_vm5, %v1717_v1, %v1726_v11  ;;  %v1905_v41 = vsel %vm1894_vm6, %v1902_v32, %v1904_v39 }
  0xe3   : > { %2731 = vmatpush3.bf16.msra.mxu0 %v3000_v19  ;;  %v3018_v19 = vld [vmem:[#allocation6 + $0x230] sm:$0xff]  }
  0xe4   : > { %2713 = vmatmul.mubr.bf16.gmra.mrb[52].mxu1 %v1320_v15  ;;  %2732 = vmatprep.subr.bf16.mxu0 %v3173_v0  ;;  %v1729_v15 = vshrl.u32 %v3678_v9, 16 }
  0xe5   : > { %2716 = vmatprep.mubr.msk.bf16.mxu1 %vm3174_vm0, %v3173_v0  ;;  %2769 = vmatpush3.bf16.msra.mxu1 %v3004_v60  ;;  %v1732_v60 = vshll.u32 %v3678_v9, 16 }
  0xe6   : > { %2770 = vmatprep.subr.bf16.mxu1 %v3173_v0  ;;  %2677 = vmatmul.mubr.bf16.gmra.mrb[52].mxu0 %v1144_v28  ;;  %v1731_v20 = vrot.slane %v1729_v15, 2  ;;  %v1524_v28 = vrot.slane %v3019_v26, 2 }
  0xe7   : > { %2680 = vmatprep.mubr.msk.bf16.mxu0 %vm3174_vm0, %v3173_v0  ;;  %2733 = vmatpush3.bf16.msra.mxu0 %v3002_v30  ;;  %v1734_v21 = vrot.slane %v1732_v60, 3  ;;  %v1873_v30 = vld [vmem:[#allocation2 + $0x8] sm:$0x8] }
  0xe8   : > { %2734 = vmatprep.subr.bf16.mxu0 %v3173_v0  ;;  %v2333_v35 = vcombine.low %v1873_v30, %v3613_v7  ;;  %v1898_v7 = vrot.slane %v3637_v38, 3 }
  0xe9   : > { %2771 = vmatpush3.bf16.msra.mxu1 %v3006_v23  ;;  %v1735_v23 = vor.u32 %v1734_v21, %v1731_v20 }
  0xea   : > { %2828 = vmatprep.subr.bf16.mxu1 %v3173_v0  ;;  %v1895_v37 = vrot.slane %v2333_v35, 3  ;;  %v1899_v42 = vsel %vm1894_vm6, %v1896_v33, %v1898_v7  ;;  %v1901_v12 = vsel %vm1894_vm6, %v1898_v7, %v1900_v31 }
  0xeb   : > { %2735 = vmatpush3.bf16.msra.mxu0 %v3005_v40  ;;  %v1736_v27 = vsel %vm1683_vm5, %v1726_v11, %v1735_v23 }
  0xec   : > { %2717 = vmatmul.mubr.bf16.gmra.mrb[56].mxu1 %v1322_v34  ;;  %2792 = vmatprep.subr.bf16.mxu0 %v3173_v0  ;;  %v1525_v34 = vsel %vm1311_vm3, %v1522_v22, %v1524_v28  ;;  %v1897_v40 = vsel %vm1894_vm6, %v1895_v37, %v1896_v33 }
  0xed   : > { %2772 = vmatprep.mubr.msk.bf16.mxu1 %vm3174_vm0, %v3173_v0 }
  0xee   : > { %2681 = vmatmul.mubr.bf16.gmra.mrb[56].mxu0 %v1153_v46 }
  0xef   : > { %2736 = vmatprep.mubr.msk.bf16.mxu0 %vm3174_vm0, %v3173_v0 }
  0xf4   : > { %2773 = vmatmul.mubr.bf16.vlgmr.msra.gmra.mrb[60].mxu1 %v1700_v47 }
  0xf5   : > { %2776 = vmatprep.mubr.msk.bf16.mxu1 %vm3174_vm0, %v3173_v0  ;;  %2836 = vmatpush3.bf16.msra.mxu1 %v3009_v13 }
  0xf6   : > { %2829 = vmatprep.subr.bf16.mxu1 %v3173_v0  ;;  %2737 = vmatmul.mubr.bf16.vlgmr.msra.gmra.mrb[60].mxu0 %v1517_v57 }
  0xf7   : > { %2793 = vmatpush3.bf16.msra.mxu0 %v3009_v13  ;;  %2740 = vmatprep.mubr.msk.bf16.mxu0 %vm3174_vm0, %v3173_v0 }
  0xf8   : > { %2794 = vmatprep.subr.bf16.mxu0 %v3173_v0 }
  0xf9   : > { %2837 = vmatpush3.bf16.msra.mxu1 %v3010_v17 }
  0xfa   : > { %2830 = vmatprep.subr.bf16.mxu1 %v3173_v0 }
  0xfb   : > { %2795 = vmatpush3.bf16.msra.mxu0 %v3010_v17 }
  0xfc   : > { %2777 = vmatmul.mubr.bf16.gmra.mrb[64].mxu1 %v1709_v58  ;;  %2796 = vmatprep.subr.bf16.mxu0 %v3173_v0 }
  0xfd   : > { %2780 = vmatprep.mubr.msk.bf16.mxu1 %vm3174_vm0, %v3173_v0  ;;  %2838 = vmatpush3.bf16.msra.mxu1 %v3012_v59 }
  0xfe   : > { %2831 = vmatprep.subr.bf16.mxu1 %v3173_v0  ;;  %2741 = vmatmul.mubr.bf16.gmra.mrb[64].mxu0 %v1519_v4 }
  0xff   : > { %2797 = vmatpush3.bf16.msra.mxu0 %v3012_v59  ;;  %2744 = vmatprep.mubr.msk.bf16.mxu0 %vm3174_vm0, %v3173_v0 }
 0x100   : > { %2798 = vmatprep.subr.bf16.mxu0 %v3173_v0 }
 0x101   : > { %2839 = vmatpush3.bf16.msra.mxu1 %v3014_v52 }
 0x102   : > { %2832 = vmatprep.subr.bf16.mxu1 %v3173_v0 }
 0x103   : > { %2799 = vmatpush3.bf16.msra.mxu0 %v3014_v52 }
 0x104   : > { %2781 = vmatmul.mubr.bf16.gmra.mrb[68].mxu1 %v1718_v49  ;;  %2800 = vmatprep.subr.bf16.mxu0 %v3173_v0 }
 0x105   : > { %2784 = vmatprep.mubr.msk.bf16.mxu1 %vm3174_vm0, %v3173_v0  ;;  %2840 = vmatpush3.bf16.msra.mxu1 %v3015_v5 }
 0x106   : > { %2833 = vmatprep.subr.bf16.mxu1 %v3173_v0  ;;  %2745 = vmatmul.mubr.bf16.gmra.mrb[68].mxu0 %v1521_v16 }
 0x107   : > { %2801 = vmatpush3.bf16.msra.mxu0 %v3015_v5  ;;  %2748 = vmatprep.mubr.msk.bf16.mxu0 %vm3174_vm0, %v3173_v0 }
 0x108   : > { %2802 = vmatprep.subr.bf16.mxu0 %v3173_v0 }
 0x109   : > { %2841 = vmatpush3.bf16.msra.mxu1 %v3017_v14 }
 0x10a   : > { %2834 = vmatprep.subr.bf16.mxu1 %v3173_v0 }
 0x10b   : > { %2803 = vmatpush3.bf16.msra.mxu0 %v3017_v14 }
 0x10c   : > { %2785 = vmatmul.mubr.bf16.gmra.mrb[72].mxu1 %v1727_v18  ;;  %2804 = vmatprep.subr.bf16.mxu0 %v3173_v0 }
 0x10d   : > { %2788 = vmatprep.mubr.msk.bf16.mxu1 %vm3174_vm0, %v3173_v0  ;;  %2842 = vmatpush3.bf16.msra.mxu1 %v3018_v19 }
 0x10e   : > { %2835 = vmatprep.subr.bf16.mxu1 %v3173_v0  ;;  %2749 = vmatmul.mubr.bf16.gmra.mrb[72].mxu0 %v1523_v25 }
 0x10f   : > { %2752 = vmatprep.mubr.msk.bf16.mxu0 %vm3174_vm0, %v3173_v0  ;;  %2805 = vmatpush3.bf16.msra.mxu0 %v3018_v19 }
 0x110   : > { %2806 = vmatprep.subr.bf16.mxu0 %v3173_v0 }
 0x111   : > { %2843 = vmatpush3.bf16.msra.mxu1 %v3021_v24 }
 0x113   : > { %2807 = vmatpush3.bf16.msra.mxu0 %v3021_v24 }
 0x114   : > { %2789 = vmatmul.mubr.bf16.gmra.mrb[76].mxu1 %v1736_v27 }
 0x115   : > { %2820 = vmatprep.mubr.msk.bf16.mxu1 %vm3174_vm0, %v3173_v0 }
 0x116   : > { %2753 = vmatmul.mubr.bf16.gmra.mrb[76].mxu0 %v1525_v34 }
 0x117   : > { %2808 = vmatprep.mubr.msk.bf16.mxu0 %vm3174_vm0, %v3173_v0 }
 0x11c   : > { %2821 = vmatmul.mubr.bf16.vlgmr.msra.gmra.mrb[80].mxu1 %v1903_v36 }
 0x11d   : > { %2824 = vmatprep.mubr.msk.bf16.mxu1 %vm3174_vm0, %v3173_v0 }
 0x11e   : > { %2809 = vmatmul.mubr.bf16.vlgmr.msra.gmra.mrb[80].mxu0 %v1897_v40 }
 0x11f   : > { %2812 = vmatprep.mubr.msk.bf16.mxu0 %vm3174_vm0, %v3173_v0 }
 0x124   : > { %2825 = vmatmul.mubr.bf16.gmra.mrb[84].mxu1 %v1905_v41 }
 0x126   : > { %2813 = vmatmul.mubr.bf16.gmra.mrb[84].mxu0 %v1899_v42 }
 0x127   : > { %2816 = vmatprep.mubr.msk.bf16.mxu0 %vm3174_vm0, %v3173_v0 }
 0x12e   : > { %2817 = vmatmul.mubr.bf16.gmra.mrb[88].mxu0 %v1901_v12 }
 0x14f   : > { %v668_v44 = vpop.f32.mrb[0].mxu1  ;;  %v542_v13 = vpop.f32.mrb[0].mxu0 }
 0x150   : > { %v2558_v45 = vpop.f32.mrb[1].mxu1  ;;  %v669_v48 = vadd.f32 %v668_v44, %v542_v13  ;;  %v2522_v50 = vpop.f32.mrb[1].mxu0 }
 0x151   : > { %v671_v46 = vpop.f32.mrb[2].mxu1  ;;  %v545_v51 = vpop.f32.mrb[2].mxu0 }
 0x152   : > { %v2559_v47 = vpop.f32.mrb[3].mxu1  ;;  %v672_v38 = vadd.f32 %v671_v46, %v545_v51  ;;  %v2523_v54 = vpop.f32.mrb[3].mxu0 }
 0x157   : > { %v676_v53 = vpop.f32.mrb[4].mxu1  ;;  %v550_v56 = vpop.f32.mrb[4].mxu0 }
 0x158   : > { %v2562_v17 = vpop.f32.mrb[5].mxu1  ;;  %v677_v57 = vadd.f32 %v676_v53, %v550_v56  ;;  %v2526_v0 = vpop.f32.mrb[5].mxu0 }
 0x159   : > { %v679_v43 = vpop.f32.mrb[6].mxu1  ;;  %v553_v58 = vpop.f32.mrb[6].mxu0 }
 0x15a   : > { %v2563_v55 = vpop.f32.mrb[7].mxu1  ;;  %v680_v29 = vadd.f32 %v679_v43, %v553_v58  ;;  %v2527_v61 = vpop.f32.mrb[7].mxu0 }
 0x15f   : > { %v684_v59 = vpop.f32.mrb[8].mxu1  ;;  %v558_v52 = vpop.f32.mrb[8].mxu0 }
 0x160   : > { %v2566_v62 = vpop.f32.mrb[9].mxu1  ;;  %v685_v2 = vadd.f32 %v684_v59, %v558_v52  ;;  %v2530_v3 = vpop.f32.mrb[9].mxu0 }
 0x161   : > { %v687_v63 = vpop.f32.mrb[10].mxu1  ;;  %v561_v4 = vpop.f32.mrb[10].mxu0 }
 0x162   : > { %v2567_v1 = vpop.f32.mrb[11].mxu1  ;;  %v688_v5 = vadd.f32 %v687_v63, %v561_v4  ;;  %v2531_v6 = vpop.f32.mrb[11].mxu0 }
 0x167   : > { %v692_v49 = vpop.f32.mrb[12].mxu1  ;;  %v566_v11 = vpop.f32.mrb[12].mxu0 }
 0x168   : > { %v2570_v8 = vpop.f32.mrb[13].mxu1  ;;  %v693_v14 = vadd.f32 %v692_v49, %v566_v11  ;;  %v2534_v15 = vpop.f32.mrb[13].mxu0 }
 0x169   : > { %v695_v9 = vpop.f32.mrb[14].mxu1  ;;  %v569_v60 = vpop.f32.mrb[14].mxu0 }
 0x16a   : > { %v2571_v10 = vpop.f32.mrb[15].mxu1  ;;  %v696_v18 = vadd.f32 %v695_v9, %v569_v60  ;;  %v2535_v19 = vpop.f32.mrb[15].mxu0 }
 0x16f   : > { %v700_v16 = vpop.f32.mrb[16].mxu1 }
 0x170   : > { %v2574_v20 = vpop.f32.mrb[17].mxu1  ;;  %v574_v23 = vpop.f32.mrb[16].mxu0 }
 0x171   : > { %v703_v21 = vpop.f32.mrb[18].mxu1  ;;  %v701_v24 = vadd.f32 %v700_v16, %v574_v23  ;;  %v2538_v25 = vpop.f32.mrb[17].mxu0 }
 0x172   : > { %v2575_v22 = vpop.f32.mrb[19].mxu1  ;;  %v577_v26 = vpop.f32.mrb[18].mxu0 }
 0x173   : > { %v704_v28 = vadd.f32 %v703_v21, %v577_v26  ;;  %v2539_v30 = vpop.f32.mrb[19].mxu0 }
 0x177   : > { %v1030_v27 = vpop.f32.mrb[20].mxu1 }
 0x178   : > { %v2630_v31 = vpop.f32.mrb[21].mxu1 }
 0x179   : > { %v1033_v32 = vpop.f32.mrb[22].mxu1  ;;  %v827_v35 = vpop.f32.mrb[20].mxu0 }
 0x17a   : > { %v2631_v34 = vpop.f32.mrb[23].mxu1  ;;  %v866_v36 = vadd.f32 %v827_v35, %v669_v48  ;;  %v2594_v37 = vpop.f32.mrb[21].mxu0 }
 0x17b   : > { %v830_v33 = vpop.f32.mrb[22].mxu0 }
 0x17c   : > { %v867_v40 = vadd.f32 %v830_v33, %v672_v38  ;;  %v1069_v41 = vadd.f32 %v1030_v27, %v866_v36  ;;  %v2595_v7 = vpop.f32.mrb[23].mxu0 }
 0x17e   : > { %v1070_v44 = vadd.f32 %v1033_v32, %v867_v40 }
 0x17f   : > { %v1038_v39 = vpop.f32.mrb[24].mxu1 }
 0x180   : > { %v2634_v42 = vpop.f32.mrb[25].mxu1 }
 0x181   : > { %v1041_v12 = vpop.f32.mrb[26].mxu1  ;;  %v835_v46 = vpop.f32.mrb[24].mxu0 }
 0x182   : > { %v2635_v45 = vpop.f32.mrb[27].mxu1  ;;  %v868_v47 = vadd.f32 %v835_v46, %v677_v57  ;;  %v2598_v13 = vpop.f32.mrb[25].mxu0 }
 0x183   : > { %v838_v50 = vpop.f32.mrb[26].mxu0 }
 0x184   : > { %v869_v53 = vadd.f32 %v838_v50, %v680_v29  ;;  %v1071_v54 = vadd.f32 %v1038_v39, %v868_v47  ;;  %v2599_v17 = vpop.f32.mrb[27].mxu0 }
 0x186   : > { %v1072_v55 = vadd.f32 %v1041_v12, %v869_v53 }
 0x187   : > { %v1046_v51 = vpop.f32.mrb[28].mxu1 }
 0x188   : > { %v2638_v43 = vpop.f32.mrb[29].mxu1 }
 0x189   : > { %v1049_v48 = vpop.f32.mrb[30].mxu1  ;;  %v843_v0 = vpop.f32.mrb[28].mxu0 }
 0x18a   : > { %v2639_v56 = vpop.f32.mrb[31].mxu1  ;;  %v870_v38 = vadd.f32 %v843_v0, %v685_v2  ;;  %v2602_v58 = vpop.f32.mrb[29].mxu0 }
 0x18b   : > { %v846_v59 = vpop.f32.mrb[30].mxu0 }
 0x18c   : > { %v871_v62 = vadd.f32 %v846_v59, %v688_v5  ;;  %v1073_v63 = vadd.f32 %v1046_v51, %v870_v38  ;;  %v2603_v1 = vpop.f32.mrb[31].mxu0 }
 0x18e   : > { %v1074_v3 = vadd.f32 %v1049_v48, %v871_v62 }
 0x18f   : > { %v1054_v61 = vpop.f32.mrb[32].mxu1 }
 0x190   : > { %v2642_v52 = vpop.f32.mrb[33].mxu1 }
 0x191   : > { %v1057_v57 = vpop.f32.mrb[34].mxu1  ;;  %v851_v49 = vpop.f32.mrb[32].mxu0 }
 0x192   : > { %v2643_v4 = vpop.f32.mrb[35].mxu1  ;;  %v872_v29 = vadd.f32 %v851_v49, %v693_v14  ;;  %v2606_v6 = vpop.f32.mrb[33].mxu0 }
 0x193   : > { %v854_v8 = vpop.f32.mrb[34].mxu0 }
 0x194   : > { %v873_v10 = vadd.f32 %v854_v8, %v696_v18  ;;  %v1075_v11 = vadd.f32 %v1054_v61, %v872_v29  ;;  %v2607_v15 = vpop.f32.mrb[35].mxu0 }
 0x196   : > { %v1076_v16 = vadd.f32 %v1057_v57, %v873_v10 }
 0x197   : > { %v1062_v9 = vpop.f32.mrb[36].mxu1 }
 0x198   : > { %v2646_v60 = vpop.f32.mrb[37].mxu1 }
 0x199   : > { %v1065_v2 = vpop.f32.mrb[38].mxu1  ;;  %v859_v20 = vpop.f32.mrb[36].mxu0 }
 0x19a   : > { %v2647_v19 = vpop.f32.mrb[39].mxu1  ;;  %v874_v5 = vadd.f32 %v859_v20, %v701_v24  ;;  %v2610_v21 = vpop.f32.mrb[37].mxu0 }
 0x19b   : > { %v862_v22 = vpop.f32.mrb[38].mxu0 }
 0x19c   : > { %v875_v25 = vadd.f32 %v862_v22, %v704_v28  ;;  %v1077_v26 = vadd.f32 %v1062_v9, %v874_v5  ;;  %v2611_v27 = vpop.f32.mrb[39].mxu0 }
 0x19e   : > { %v1078_v31 = vadd.f32 %v1065_v2, %v875_v25 }
 0x19f   : > { %v1410_v23 = vpop.f32.mrb[40].mxu1 }
 0x1a0   : > { %v2702_v30 = vpop.f32.mrb[41].mxu1 }
 0x1a1   : > { %v1413_v14 = vpop.f32.mrb[42].mxu1  ;;  %v1241_v34 = vpop.f32.mrb[40].mxu0 }
 0x1a2   : > { %v2703_v32 = vpop.f32.mrb[43].mxu1  ;;  %v1280_v18 = vadd.f32 %v1241_v34, %v1069_v41  ;;  %v2666_v35 = vpop.f32.mrb[41].mxu0 }
 0x1a3   : > { %v1244_v36 = vpop.f32.mrb[42].mxu0 }
 0x1a4   : > { %v1281_v33 = vadd.f32 %v1244_v36, %v1070_v44  ;;  %v1449_v39 = vadd.f32 %v1410_v23, %v1280_v18  ;;  %v2667_v40 = vpop.f32.mrb[43].mxu0 }
 0x1a6   : > { %v1450_v42 = vadd.f32 %v1413_v14, %v1281_v33 }
 0x1a7   : > { %v1418_v37 = vpop.f32.mrb[44].mxu1 }
 0x1a8   : > { %v2706_v7 = vpop.f32.mrb[45].mxu1 }
 0x1a9   : > { %v1421_v24 = vpop.f32.mrb[46].mxu1  ;;  %v1249_v45 = vpop.f32.mrb[44].mxu0 }
 0x1aa   : > { %v2707_v12 = vpop.f32.mrb[47].mxu1  ;;  %v1282_v28 = vadd.f32 %v1249_v45, %v1071_v54  ;;  %v2670_v46 = vpop.f32.mrb[45].mxu0 }
 0x1ab   : > { %v1252_v47 = vpop.f32.mrb[46].mxu0 }
 0x1ac   : > { %v1283_v50 = vadd.f32 %v1252_v47, %v1072_v55  ;;  %v1451_v51 = vadd.f32 %v1418_v37, %v1282_v28  ;;  %v2671_v53 = vpop.f32.mrb[47].mxu0 }
 0x1ae   : > { %v1452_v43 = vadd.f32 %v1421_v24, %v1283_v50 }
 0x1af   : > { %v1426_v13 = vpop.f32.mrb[48].mxu1 }
 0x1b0   : > { %v2710_v17 = vpop.f32.mrb[49].mxu1 }
 0x1b1   : > { %v1429_v41 = vpop.f32.mrb[50].mxu1  ;;  %v1257_v56 = vpop.f32.mrb[48].mxu0 }
 0x1b2   : > { %v2711_v48 = vpop.f32.mrb[51].mxu1  ;;  %v1284_v44 = vadd.f32 %v1257_v56, %v1073_v63  ;;  %v2674_v0 = vpop.f32.mrb[49].mxu0 }
 0x1b3   : > { %v1260_v38 = vpop.f32.mrb[50].mxu0 }
 0x1b4   : > { %v1285_v59 = vadd.f32 %v1260_v38, %v1074_v3  ;;  %v1453_v61 = vadd.f32 %v1426_v13, %v1284_v44  ;;  %v2675_v62 = vpop.f32.mrb[51].mxu0 }
 0x1b6   : > { %v1454_v52 = vadd.f32 %v1429_v41, %v1285_v59 }
 0x1b7   : > { %v1434_v58 = vpop.f32.mrb[52].mxu1 }
 0x1b8   : > { %v2714_v1 = vpop.f32.mrb[53].mxu1 }
 0x1b9   : > { %v1437_v54 = vpop.f32.mrb[54].mxu1  ;;  %v1265_v4 = vpop.f32.mrb[52].mxu0 }
 0x1ba   : > { %v2715_v57 = vpop.f32.mrb[55].mxu1  ;;  %v1286_v55 = vadd.f32 %v1265_v4, %v1075_v11  ;;  %v2678_v49 = vpop.f32.mrb[53].mxu0 }
 0x1bb   : > { %v1268_v29 = vpop.f32.mrb[54].mxu0 }
 0x1bc   : > { %v1287_v8 = vadd.f32 %v1268_v29, %v1076_v16  ;;  %v1455_v9 = vadd.f32 %v1434_v58, %v1286_v55  ;;  %v2679_v10 = vpop.f32.mrb[55].mxu0 }
 0x1be   : > { %v1456_v60 = vadd.f32 %v1437_v54, %v1287_v8 }
 0x1bf   : > { %v1442_v6 = vpop.f32.mrb[56].mxu1 }
 0x1c0   : > { %v2718_v15 = vpop.f32.mrb[57].mxu1 }
 0x1c1   : > { %v1445_v63 = vpop.f32.mrb[58].mxu1  ;;  %v1273_v19 = vpop.f32.mrb[56].mxu0 }
 0x1c2   : > { %v2719_v2 = vpop.f32.mrb[59].mxu1  ;;  %v1288_v3 = vadd.f32 %v1273_v19, %v1077_v26  ;;  %v2682_v20 = vpop.f32.mrb[57].mxu0 }
 0x1c3   : > { %v1276_v5 = vpop.f32.mrb[58].mxu0  ;;  %v3743_v20 = vld [vmem:[%s3830_s2] ss:$0 sm:$0xff] }
 0x1c4   : > { %v1289_v22 = vadd.f32 %v1276_v5, %v1078_v31  ;;  %v1457_v23 = vadd.f32 %v1442_v6, %v1288_v3  ;;  %v2683_v25 = vpop.f32.mrb[59].mxu0 }
 0x1c6   : > { %v1458_v30 = vadd.f32 %v1445_v63, %v1289_v22 }
 0x1c7   : > { %v1824_v21 = vpop.f32.mrb[60].mxu1 }
 0x1c8   : > { %v2774_v27 = vpop.f32.mrb[61].mxu1 }
 0x1c9   : > { %v1827_v11 = vpop.f32.mrb[62].mxu1  ;;  %v1613_v32 = vpop.f32.mrb[60].mxu0 }
 0x1ca   : > { %v2775_v14 = vpop.f32.mrb[63].mxu1  ;;  %v1652_v16 = vadd.f32 %v1613_v32, %v1449_v39  ;;  %v2738_v34 = vpop.f32.mrb[61].mxu0 }
 0x1cb   : > { %v1616_v18 = vpop.f32.mrb[62].mxu0 }
 0x1cc   : > { %v1653_v36 = vadd.f32 %v1616_v18, %v1450_v42  ;;  %v1863_v37 = vadd.f32 %v1824_v21, %v1652_v16  ;;  %v2739_v33 = vpop.f32.mrb[63].mxu0 }
 0x1ce   : > { %v3729_v7 = vadd.f32 %v1827_v11, %v1653_v36 }
 0x1cf   : > { %v1832_v35 = vpop.f32.mrb[64].mxu1 }
 0x1d0   : > { %v2778_v40 = vpop.f32.mrb[65].mxu1 }
 0x1d1   : > { %v1835_v26 = vpop.f32.mrb[66].mxu1  ;;  %v1621_v31 = vpop.f32.mrb[64].mxu0 }
 0x1d2   : > { %v2779_v24 = vpop.f32.mrb[67].mxu1  ;;  %v1654_v12 = vadd.f32 %v1621_v31, %v1451_v51  ;;  %v2742_v45 = vpop.f32.mrb[65].mxu0 }
 0x1d3   : > { %v1624_v28 = vpop.f32.mrb[66].mxu0 }
 0x1d4   : > { %v1655_v47 = vadd.f32 %v1624_v28, %v1452_v43  ;;  %v3731_v13 = vadd.f32 %v1832_v35, %v1654_v12  ;;  %v2743_v39 = vpop.f32.mrb[67].mxu0 }
 0x1d6   : > { %v3733_v17 = vadd.f32 %v1835_v26, %v1655_v47 }
 0x1d7   : > { %v1840_v46 = vpop.f32.mrb[68].mxu1 }
 0x1d8   : > { %v2782_v50 = vpop.f32.mrb[69].mxu1 }
 0x1d9   : > { %v1843_v53 = vpop.f32.mrb[70].mxu1  ;;  %v1629_v41 = vpop.f32.mrb[68].mxu0 }
 0x1da   : > { %v2783_v42 = vpop.f32.mrb[71].mxu1  ;;  %v1656_v48 = vadd.f32 %v1629_v41, %v1453_v61  ;;  %v2746_v56 = vpop.f32.mrb[69].mxu0 }
 0x1db   : > { %v1632_v44 = vpop.f32.mrb[70].mxu0 }
 0x1dc   : > { %v1657_v38 = vadd.f32 %v1632_v44, %v1454_v52  ;;  %v3735_v58 = vadd.f32 %v1840_v46, %v1656_v48  ;;  %v2747_v51 = vpop.f32.mrb[71].mxu0 }
 0x1de   : > { %v3737_v43 = vadd.f32 %v1843_v53, %v1657_v38 }
 0x1df   : > { %v1848_v0 = vpop.f32.mrb[72].mxu1 }
 0x1e0   : > { %v2786_v59 = vpop.f32.mrb[73].mxu1 }
 0x1e1   : > { %v1851_v62 = vpop.f32.mrb[74].mxu1  ;;  %v1637_v54 = vpop.f32.mrb[72].mxu0 }
 0x1e2   : > { %v2787_v1 = vpop.f32.mrb[75].mxu1  ;;  %v1658_v57 = vadd.f32 %v1637_v54, %v1455_v9  ;;  %v2750_v4 = vpop.f32.mrb[73].mxu0 }
 0x1e3   : > { %v1640_v55 = vpop.f32.mrb[74].mxu0 }
 0x1e4   : > { %v1659_v29 = vadd.f32 %v1640_v55, %v1456_v60  ;;  %v1869_v61 = vadd.f32 %v1848_v0, %v1658_v57  ;;  %v2751_v6 = vpop.f32.mrb[75].mxu0 }
 0x1e6   : > { %v1870_v52 = vadd.f32 %v1851_v62, %v1659_v29 }
 0x1e7   : > { %v1856_v49 = vpop.f32.mrb[76].mxu1 }
 0x1e8   : > { %v2790_v8 = vpop.f32.mrb[77].mxu1 }
 0x1e9   : > { %v1859_v10 = vpop.f32.mrb[78].mxu1  ;;  %v1645_v63 = vpop.f32.mrb[76].mxu0 }
 0x1ea   : > { %v2791_v15 = vpop.f32.mrb[79].mxu1  ;;  %v1660_v2 = vadd.f32 %v1645_v63, %v1457_v23  ;;  %v2754_v19 = vpop.f32.mrb[77].mxu0 }
 0x1eb   : > { %v1648_v3 = vpop.f32.mrb[78].mxu0 }
 0x1ec   : > { %v1661_v5 = vadd.f32 %v1648_v3, %v1458_v30  ;;  %v1871_v21 = vadd.f32 %v1856_v49, %v1660_v2  ;;  %v2755_v60 = vpop.f32.mrb[79].mxu0 }
 0x1ee   : > { %v1872_v11 = vadd.f32 %v1859_v10, %v1661_v5 }
 0x1ef   : > { %v2017_v9 = vpop.f32.mrb[80].mxu1 }
 0x1f0   : > { %v2038_v22 = vadd.f32 %v2017_v9, %v1869_v61  ;;  %v2822_v25 = vpop.f32.mrb[81].mxu1 }
 0x1f1   : > { %v2020_v27 = vpop.f32.mrb[82].mxu1  ;;  %v1993_v18 = vpop.f32.mrb[80].mxu0 }
 0x1f2   : > { %v2055_v14 = vadd.f32 %v3743_v20, %v2038_v22  ;;  %v2039_v32 = vadd.f32 %v2020_v27, %v1870_v52  ;;  %v2823_v23 = vpop.f32.mrb[83].mxu1  ;;  %v2032_v35 = vadd.f32 %v1993_v18, %v1863_v37  ;;  %v2810_v30 = vpop.f32.mrb[81].mxu0 }
 0x1f3   : > { %v1996_v33 = vpop.f32.mrb[82].mxu0 }
 0x1f4   : > { %v2065_v16 = vmax.f32 %v2055_v14, 0.0  ;;  %v2056_v34 = vadd.f32 %v3743_v20, %v2039_v32  ;;  %v2049_v26 = vadd.f32 %v3743_v20, %v2032_v35  ;;  %v2033_v24 = vadd.f32 %v1996_v33, %v3729_v7  ;;  %v2811_v31 = vpop.f32.mrb[83].mxu0 }
 0x1f6   : > { %2075 = vst [vmem:[%s3747_s10 + $0x30] sm:$0xff] %v2065_v16  ;;  %v2066_v36 = vmax.f32 %v2056_v34, 0.0  ;;  %v2059_v28 = vmax.f32 %v2049_v26, 0.0  ;;  %v2050_v46 = vadd.f32 %v3743_v20, %v2033_v24 }
 0x1f7   : > { %v2025_v40 = vpop.f32.mrb[84].mxu1 }
 0x1f8   : > { %2076 = vst [vmem:[%s3747_s10 + $0x38] sm:$0xff] %v2066_v36  ;;  %v2040_v12 = vadd.f32 %v2025_v40, %v1871_v21  ;;  %v2826_v37 = vpop.f32.mrb[85].mxu1  ;;  %2069 = vst [vmem:[%s3747_s10] sm:$0xff] %v2059_v28  ;;  %v2060_v53 = vmax.f32 %v2050_v46, 0.0 }
 0x1f9   : > { %v2028_v45 = vpop.f32.mrb[86].mxu1  ;;  %v2001_v41 = vpop.f32.mrb[84].mxu0 }
 0x1fa   : > { %v2057_v47 = vadd.f32 %v3743_v20, %v2040_v12  ;;  %v2041_v39 = vadd.f32 %v2028_v45, %v1872_v11  ;;  %v2827_v50 = vpop.f32.mrb[87].mxu1  ;;  %2070 = vst [vmem:[%s3747_s10 + $0x8] sm:$0xff] %v2060_v53  ;;  %v2034_v48 = vadd.f32 %v2001_v41, %v3731_v13  ;;  %v2814_v56 = vpop.f32.mrb[85].mxu0 }
 0x1fb   : > { %v2004_v0 = vpop.f32.mrb[86].mxu0 }
 0x1fc   : > { %v2067_v42 = vmax.f32 %v2057_v47, 0.0  ;;  %v2058_v7 = vadd.f32 %v3743_v20, %v2041_v39  ;;  %v2051_v38 = vadd.f32 %v3743_v20, %v2034_v48  ;;  %v2035_v51 = vadd.f32 %v2004_v0, %v3733_v17  ;;  %v2815_v59 = vpop.f32.mrb[87].mxu0 }
 0x1fe   : > { %2077 = vst [vmem:[%s3747_s10 + $0x40] sm:$0xff] %v2067_v42  ;;  %v2068_v44 = vmax.f32 %v2058_v7, 0.0  ;;  %v2061_v62 = vmax.f32 %v2051_v38, 0.0  ;;  %v2052_v1 = vadd.f32 %v3743_v20, %v2035_v51 }
 0x200   : > { %2078 = vst [vmem:[%s3747_s10 + $0x48] sm:$0xff] %v2068_v44  ;;  %2071 = vst [vmem:[%s3747_s10 + $0x10] sm:$0xff] %v2061_v62  ;;  %v2062_v54 = vmax.f32 %v2052_v1, 0.0 }
 0x201   : > { %v2009_v57 = vpop.f32.mrb[88].mxu0 }
 0x202   : > { %2072 = vst [vmem:[%s3747_s10 + $0x18] sm:$0xff] %v2062_v54  ;;  %v2036_v13 = vadd.f32 %v2009_v57, %v3735_v58  ;;  %v2818_v4 = vpop.f32.mrb[89].mxu0 }
 0x203   : > { %v2012_v55 = vpop.f32.mrb[90].mxu0 }
 0x204   : > { %v2053_v17 = vadd.f32 %v3743_v20, %v2036_v13  ;;  %v2037_v49 = vadd.f32 %v2012_v55, %v3737_v43  ;;  %v2819_v29 = vpop.f32.mrb[91].mxu0 }
 0x206   : > { %v2063_v61 = vmax.f32 %v2053_v17, 0.0  ;;  %v2054_v6 = vadd.f32 %v3743_v20, %v2037_v49 }
 0x208   : > { %2073 = vst [vmem:[%s3747_s10 + $0x20] sm:$0xff] %v2063_v61  ;;  %v2064_v58 = vmax.f32 %v2054_v6, 0.0 }
 0x20a   : > { %2074 = vst [vmem:[%s3747_s10 + $0x28] sm:$0xff] %v2064_v58 }
 0x20b   : > { %3094 = shalt.err (!%p3091_p5)
}
 0x20c   : > { %s3095_s26 = scalar_lea.hbm %s3775_s19, 1280  ;;  %s3099_s20 = scalar_lea.hbm %s3831_s3, 2560 }
 0x20d   : > { %p3096_p9 = scmp.ne.s32.totalorder %s3775_s19, %s3095_s26  ;;  %p3100_p3 = scmp.lt.u32.totalorder %s3775_s19, %s3831_s3 }
 0x20e   : > { %p3101_p7 = scmp.lt.u32.totalorder %s3099_s20, %s3095_s26  ;;  %p3103_p4 = scmp.lt.u32.totalorder %s3095_s26, %s3775_s19 }
 0x20f   : > { %p3097_p1 = pnand %p3096_p9, %p3293_p10 }
 0x210   : > { %p3102_p11 = por %p3101_p7, %p3100_p3 }
 0x211   : > { %p3098_p2 = pneg %p3097_p1 }
 0x212   : > { %p3104_p6 = por %p3103_p4, %p3102_p11 }
 0x214   : > { %p3105_p8 = pnand %p3104_p6, %p3098_p2 }
 0x216   : > { %3108 = shalt.err (!%p3105_p8)
}
 0x217   : > { %s3176_s10 = smov 128   ;;  %s3177_s11 = smov 8  }
 0x218   : > { %2855 = dma.vmem_to_hbm [thread:$0]  (%p3293_p10), %s3777_s7, 1280, %s3775_s19, %s2080_s15, %s3176_s10, %s3176_s10, %s3177_s11  }
 0x219 PF: > { %s2110_s8 = sand.u32 1, %s3147_s12   ;;  %p3848_p12 = scmp.ne.s32.totalorder %s3839_s23, 0 }
 0x21a   : > { %p3849_p13 = scmp.ge.s32.totalorder %s3167_s17, 2  ;;  %s2111_s18 = scalar_lea.sflag [#allocation5], %s2110_s8 }
 0x21c   : > { %p2866_p0 = pnand %p3849_p13, %p3848_p12 }
 0x21e   : > { %3142 = dma.done.wait (!%p2866_p0), %s2111_s18, 1280  }
 0x21f   : > { %3144 = vsyncadd (!%p2866_p0), %s2111_s18, 4294966016  ;;  %s20_s17 = sadd.s32 1, %s3167_s17   ;;  %s3850_s12 = smov %s3151_s13 }
 0x220   : > { %p17_p5 = scmp.ge.s32.totalorder %s20_s17, 4   ;;  %s3851_s13 = smov %s3155_s14 }
 0x221   : > { %s3852_s14 = smov %s3302_s5  ;;  %s3853_s15 = smov %s3163_s16 }
 0x222   : > { %s3854_s16 = smov %s3856_s28  ;;  %19 = sbr.rel (!%p17_p5) target bundleno = 7 (0x7), region = 93 }
 0x229   :  { %2116 = vsyncpa [#allocation4], 1 }
 0x22a   :  { %2118 = vsyncpa [#allocation4 + $0x1], 1 }
 0x22b   :  { %2119 = vsyncpa [#allocation7], 1 }
 0x22c   :  { %2120 = vsyncpa [#allocation5], 1 }
 0x22d   :  { %2122 = vsyncpa [#allocation5 + $0x1], 1 }

</bundles_post_ra>
